<compile_context>
chip_gen: v5e
topology: v5e:2x2
jax: 0.10.0
libtpu: 0.0.40
codegen_flags: <defaults>
</compile_context>

<pallas_src>
import functools
import math
from collections import namedtuple

import jax
import jax.numpy as jnp
from jax.experimental import pallas as pl
from jax.experimental.pallas import tpu as pltpu

BlockArgs = namedtuple(
    "BlockArgs",
    ["num_repeat", "kernel_size", "stride", "expand_ratio",
     "input_filters", "output_filters", "se_ratio", "id_skip"])

GlobalParams = namedtuple(
    "GlobalParams",
    ["batch_norm_momentum", "batch_norm_epsilon", "dropout_rate",
     "drop_connect_rate", "num_classes", "width_coefficient",
     "depth_coefficient", "depth_divisor", "min_depth", "image_size"])


# ----------------------------- generation-dependent tuning -----------------------------

def _device_kind():
    try:
        return jax.devices()[0].device_kind.lower()
    except Exception:
        return ""

_KIND = _device_kind()
if "v7" in _KIND:
    _VMEM_LIMIT = 48 * 1024 * 1024          # 64 MiB physical per TC on v7x
elif ("v6" in _KIND) or ("v5" in _KIND) or ("v4" in _KIND):
    _VMEM_LIMIT = 96 * 1024 * 1024          # 128 MiB physical VMEM
else:
    _VMEM_LIMIT = 32 * 1024 * 1024          # conservative fallback
# bf16 VPU taps only where the VPU runs bf16 natively (v6e / v7x); f32 on v5e.
_BF16_VPU = ("v6" in _KIND) or ("v7" in _KIND)


# ----------------------------- config helpers (glue) -----------------------------

def round_filters(filters, gp):
    multiplier = gp.width_coefficient
    if not multiplier:
        return filters
    divisor = gp.depth_divisor
    min_depth = gp.min_depth
    filters *= multiplier
    min_depth = min_depth or divisor
    new_filters = max(min_depth, int(filters + divisor / 2) // divisor * divisor)
    if new_filters < 0.9 * filters:
        new_filters += divisor
    return int(new_filters)


def round_repeats(repeats, gp):
    multiplier = gp.depth_coefficient
    if not multiplier:
        return repeats
    return int(math.ceil(multiplier * repeats))


def _round_up(x, m):
    return ((x + m - 1) // m) * m


# ----------------------------- fused 1x1 conv (batch collapsed into rows) --------------

def _mm_kernel(x_ref, w_ref, b_ref, o_ref, *, activation):
    x = x_ref[...]
    if x.dtype != jnp.bfloat16:
        x = x.astype(jnp.bfloat16)
    y = jnp.dot(x, w_ref[...], preferred_element_type=jnp.float32) + b_ref[...]
    if activation == "swish":
        y = y * jax.nn.sigmoid(y)
    o_ref[...] = y.astype(o_ref.dtype)


def matmul_bn_act(x2, w, b, *, activation=None, tm=512):
    """x2:(M,Cin) bf16, w:(Cin,Cout) bf16 (BN folded), b:(1,Cout) f32 -> (M,Cout) bf16."""
    m, cin = x2.shape
    cout = w.shape[1]
    tm_eff = min(tm, _round_up(m, 8))
    mp = _round_up(m, tm_eff)
    if mp != m:
        x2 = jnp.pad(x2, ((0, mp - m), (0, 0)))
    out = pl.pallas_call(
        functools.partial(_mm_kernel, activation=activation),
        out_shape=jax.ShapeDtypeStruct((mp, cout), jnp.bfloat16),
        grid=(mp // tm_eff,),
        in_specs=[pl.BlockSpec((tm_eff, cin), lambda i: (i, 0)),
                  pl.BlockSpec((cin, cout), lambda i: (0, 0)),
                  pl.BlockSpec((1, cout), lambda i: (0, 0))],
        out_specs=pl.BlockSpec((tm_eff, cout), lambda i: (i, 0)),
        compiler_params=pltpu.CompilerParams(
            dimension_semantics=("parallel",),
            vmem_limit_bytes=_VMEM_LIMIT),
    )(x2, w, b)
    return out[:m] if mp != m else out


# ----------------------------- projection conv (SE gate + residual fused) --------------

def _proj_kernel(x_ref, w_ref, b_ref, *rest, has_gate, has_skip):
    o_ref = rest[-1]
    x = x_ref[0]                                       # (tm, Cin) bf16
    if x.dtype != jnp.bfloat16:
        x = x.astype(jnp.bfloat16)
    pos = 0
    if has_gate:
        g = jax.nn.sigmoid(rest[pos][0, 0]).astype(x.dtype)   # (Cin,)
        x = x * g
        pos += 1
    y = jnp.dot(x, w_ref[...], preferred_element_type=jnp.float32) + b_ref[...]
    if has_skip:
        y = y + rest[pos][0].astype(jnp.float32)
    o_ref[0] = y.astype(o_ref.dtype)


def proj_conv(x3, w, b, *, gate=None, skip3=None, tm=512):
    """x3:(N,HW,Cin) bf16, gate:(N,Cin) pre-sigmoid f32 or None, skip3:(N,HW,Cout) or None."""
    n, hw, cin = x3.shape
    cout = w.shape[1]
    tm_eff = min(tm, _round_up(hw, 8))
    hwp = _round_up(hw, tm_eff)
    if hwp != hw:
        x3 = jnp.pad(x3, ((0, 0), (0, hwp - hw), (0, 0)))
        if skip3 is not None:
            skip3 = jnp.pad(skip3, ((0, 0), (0, hwp - hw), (0, 0)))

    operands = [x3, w, b]
    in_specs = [pl.BlockSpec((1, tm_eff, cin), lambda i, j: (i, j, 0)),
                pl.BlockSpec((cin, cout), lambda i, j: (0, 0)),
                pl.BlockSpec((1, cout), lambda i, j: (0, 0))]
    if gate is not None:
        operands.append(gate[:, None, :])                       # (N,1,Cin)
        in_specs.append(pl.BlockSpec((1, 1, cin), lambda i, j: (i, 0, 0)))
    if skip3 is not None:
        operands.append(skip3)
        in_specs.append(pl.BlockSpec((1, tm_eff, cout), lambda i, j: (i, j, 0)))

    out = pl.pallas_call(
        functools.partial(_proj_kernel, has_gate=gate is not None,
                          has_skip=skip3 is not None),
        out_shape=jax.ShapeDtypeStruct((n, hwp, cout), jnp.bfloat16),
        grid=(n, hwp // tm_eff),
        in_specs=in_specs,
        out_specs=pl.BlockSpec((1, tm_eff, cout), lambda i, j: (i, j, 0)),
        compiler_params=pltpu.CompilerParams(
            dimension_semantics=("parallel", "parallel"),
            vmem_limit_bytes=_VMEM_LIMIT),
    )(*operands)
    return out[:, :hw] if hwp != hw else out


# ----------------------------- depthwise conv (row-chunked, batch folded to lanes) -----

def _dw_kernel(ph_hbm, w_ref, b_ref, o_ref, sq_ref, in_buf, sem, sq_acc,
               *, k, s, oh, ow, tr, halo, bf16_vpu):
    j = pl.program_id(0)
    nchunks = pl.num_programs(0)
    rows_in = tr + halo

    def start_fetch(chunk, slot):
        pltpu.make_async_copy(
            ph_hbm.at[:, pl.ds(chunk * tr, rows_in)],
            in_buf.at[slot], sem.at[slot]).start()

    @pl.when(j == 0)
    def _():
        sq_acc[...] = jnp.zeros_like(sq_acc)
        start_fetch(0, 0)

    slot = j % 2
    # wait for this chunk's rows (dummy src slice of matching shape)
    pltpu.make_async_copy(ph_hbm.at[:, pl.ds(0, rows_in)],
                          in_buf.at[slot], sem.at[slot]).wait()

    @pl.when(j + 1 < nchunks)
    def _():
        start_fetch(j + 1, 1 - slot)

    cur = in_buf.at[slot]
    w = w_ref[...]                                     # (k*k, Cf), BN scale folded
    cf = o_ref.shape[-1]
    acc = jnp.zeros((tr, ow, cf), jnp.float32)
    for i in range(k):
        for jj in range(k):
            phase = (i % s) * s + (jj % s)
            tap = cur[phase, pl.ds(i // s, tr), pl.ds(jj // s, ow), :]
            if bf16_vpu:
                acc = acc + (tap * w[i * k + jj]).astype(jnp.float32)
            else:
                acc = acc + tap.astype(jnp.float32) * w[i * k + jj].astype(jnp.float32)
    y = acc + b_ref[...]
    y = y * jax.nn.sigmoid(y)                          # swish
    o_ref[...] = y.astype(o_ref.dtype)

    # SE squeeze: accumulate spatial sums (mask rows beyond oh introduced by row padding)
    row_ids = jax.lax.broadcasted_iota(jnp.int32, (tr, 1, 1), 0) + j * tr
    ym = jnp.where(row_ids < oh, y, 0.0)
    sq_acc[...] += jnp.sum(jnp.sum(ym, axis=0), axis=0)[None, :]

    @pl.when(j == nchunks - 1)
    def _():
        sq_ref[...] = sq_acc[...] * (1.0 / float(oh * ow))


def dwconv_bn_swish_pool(x, w_kkc, b_1c, k, s):
    """x:(N,H,W,C) bf16 -> (swish(BN(dwconv(x))) bf16, per-image channel mean f32)."""
    n, ih, iw, c = x.shape
    xp, oh, ow = _same_pad(x, k, s)                    # (N, Hp, Wp, C)
    hp, wp = xp.shape[1], xp.shape[2]
    cf = n * c

    if s == 1:
        nph, hph, wph = 1, hp, wp
        ph = jnp.transpose(xp, (1, 2, 0, 3)).reshape(1, hp, wp, cf)
    else:
        # space-to-batch phase split: makes every in-kernel tap read contiguous.
        hph, wph = -(-hp // s), -(-wp // s)
        xpp = jnp.pad(xp, ((0, 0), (0, hph * s - hp), (0, wph * s - wp), (0, 0)))
        ph = jnp.transpose(xpp.reshape(n, hph, s, wph, s, c), (2, 4, 1, 3, 0, 5))
        nph = s * s
        ph = ph.reshape(nph, hph, wph, cf)

    halo = (k - 1) // s
    # output-row chunk: bound VMEM and keep >=2 chunks (when possible) for DMA overlap.
    row_bytes = nph * wph * cf * ph.dtype.itemsize
    tr = min(oh, 32, max(1, (4 * 1024 * 1024) // max(row_bytes, 1)))
    if oh > 8:
        tr = max(1, min(tr, -(-oh // 2)))
    nchunks = -(-oh // tr)
    rows_needed = nchunks * tr + halo
    if rows_needed > hph:
        ph = jnp.pad(ph, ((0, 0), (0, rows_needed - hph), (0, 0), (0, 0)))
    rows_in = tr + halo

    # per-channel weights/bias tiled over the folded batch axis (Cf index = n*C + c)
    w_f = jnp.tile(w_kkc, (1, n))
    b_f = jnp.tile(b_1c, (1, n))

    out, sq = pl.pallas_call(
        functools.partial(_dw_kernel, k=k, s=s, oh=oh, ow=ow, tr=tr, halo=halo,
                          bf16_vpu=_BF16_VPU),
        out_shape=(jax.ShapeDtypeStruct((nchunks * tr, ow, cf), jnp.bfloat16),
                   jax.ShapeDtypeStruct((1, cf), jnp.float32)),
        grid=(nchunks,),
        in_specs=[pl.BlockSpec(memory_space=pl.ANY),            # stays in HBM, manual DMA
                  pl.BlockSpec((k * k, cf), lambda j: (0, 0)),
                  pl.BlockSpec((1, cf), lambda j: (0, 0))],
        out_specs=(pl.BlockSpec((tr, ow, cf), lambda j: (j, 0, 0)),
                   pl.BlockSpec((1, cf), lambda j: (0, 0))),
        scratch_shapes=[pltpu.VMEM((2, nph, rows_in, wph, cf), ph.dtype),
                        pltpu.SemaphoreType.DMA((2,)),
                        pltpu.VMEM((1, cf), jnp.float32)],
        compiler_params=pltpu.CompilerParams(
            dimension_semantics=("arbitrary",),
            vmem_limit_bytes=_VMEM_LIMIT),
    )(ph, w_f, b_f)

    out = out[:oh]                                               # (oh, ow, N*C)
    out = jnp.transpose(out.reshape(oh, ow, n, c), (2, 0, 1, 3))  # (N, oh, ow, C)
    return out, sq.reshape(n, c)


# ----------------------------- SE (two tiny matmuls, fused) -----------------------------

def _se_kernel(sq_ref, wr_ref, br_ref, we_ref, be_ref, o_ref):
    r = jnp.dot(sq_ref[...], wr_ref[...], preferred_element_type=jnp.float32) + br_ref[...]
    r = r * jax.nn.sigmoid(r)
    o_ref[...] = jnp.dot(r, we_ref[...], preferred_element_type=jnp.float32) + be_ref[...]


def se_forward(sq, bp):
    n, c = sq.shape
    return pl.pallas_call(
        _se_kernel,
        out_shape=jax.ShapeDtypeStruct((n, c), jnp.float32),
        compiler_params=pltpu.CompilerParams(vmem_limit_bytes=_VMEM_LIMIT),
    )(sq, bp["se_r_w"], bp["se_r_b"], bp["se_e_w"], bp["se_e_b"])


# ----------------------------- head conv + swish + global average pool (fused) ---------

def _head_pool_kernel(x_ref, w_ref, b_ref, o_ref, acc_ref, *, hw, tm):
    j = pl.program_id(1)

    @pl.when(j == 0)
    def _():
        acc_ref[...] = jnp.zeros_like(acc_ref)

    x = x_ref[0]
    if x.dtype != jnp.bfloat16:
        x = x.astype(jnp.bfloat16)
    y = jnp.dot(x, w_ref[...], preferred_element_type=jnp.float32) + b_ref[...]
    y = y * jax.nn.sigmoid(y)                                    # swish
    rows = jax.lax.broadcasted_iota(jnp.int32, (tm, 1), 0) + j * tm
    y = jnp.where(rows < hw, y, 0.0)                             # mask padded rows
    acc_ref[...] += jnp.sum(y, axis=0, keepdims=True)

    @pl.when(j == pl.num_programs(1) - 1)
    def _():
        o_ref[...] = acc_ref[...] * (1.0 / float(hw))


def head_pool(x3, w, b, *, tm=512):
    """x3:(N,HW,Cin) bf16 -> pooled swish(BN(head_conv(x))) as (N,Cout) f32."""
    n, hw, cin = x3.shape
    cout = w.shape[1]
    tm_eff = min(tm, _round_up(hw, 8))
    hwp = _round_up(hw, tm_eff)
    if hwp != hw:
        x3 = jnp.pad(x3, ((0, 0), (0, hwp - hw), (0, 0)))
    return pl.pallas_call(
        functools.partial(_head_pool_kernel, hw=hw, tm=tm_eff),
        out_shape=jax.ShapeDtypeStruct((n, cout), jnp.float32),
        grid=(n, hwp // tm_eff),
        in_specs=[pl.BlockSpec((1, tm_eff, cin), lambda i, j: (i, j, 0)),
                  pl.BlockSpec((cin, cout), lambda i, j: (0, 0)),
                  pl.BlockSpec((1, cout), lambda i, j: (0, 0))],
        out_specs=pl.BlockSpec((1, cout), lambda i, j: (i, 0)),
        scratch_shapes=[pltpu.VMEM((1, cout), jnp.float32)],
        compiler_params=pltpu.CompilerParams(
            dimension_semantics=("parallel", "arbitrary"),
            vmem_limit_bytes=_VMEM_LIMIT),
    )(x3, w, b)


def _fc_kernel(x_ref, w_ref, b_ref, o_ref):
    o_ref[...] = jnp.dot(x_ref[...], w_ref[...],
                         preferred_element_type=jnp.float32) + b_ref[...]


# ----------------------------- conv glue (padding / im2col for the stem) ----------------

def _same_pad(x, k, s):
    """TF-style SAME padding (matches get_same_padding_conv2d)."""
    n, ih, iw, c = x.shape
    oh = -(-ih // s)
    ow = -(-iw // s)
    ph = max((oh - 1) * s + k - ih, 0)
    pw = max((ow - 1) * s + k - iw, 0)
    xp = jnp.pad(x, ((0, 0), (ph // 2, ph - ph // 2), (pw // 2, pw - pw // 2), (0, 0)))
    return xp, oh, ow


def im2col(x, k, s):
    """Only used for the 3-channel stem conv (9x blowup on 3 channels is negligible)."""
    xp, oh, ow = _same_pad(x, k, s)
    n, hp, wp, c = xp.shape
    cols = []
    for i in range(k):
        for j in range(k):
            cols.append(jax.lax.slice(
                xp, (0, i, j, 0),
                (n, i + (oh - 1) * s + 1, j + (ow - 1) * s + 1, c),
                (1, s, s, 1)))
    p = jnp.stack(cols, axis=3)                        # (N, oh, ow, k*k, C)
    return p.reshape(n, oh * ow, k * k * c), oh, ow


def fold_bn(bn, eps):
    s = bn["gamma"] / jnp.sqrt(bn["var"] + eps)
    b = bn["beta"] - bn["mean"] * s
    return s, b


# ----------------------------- parameter construction (deterministic) -------------------

class KeyGen:
    def __init__(self, seed):
        self.key = jax.random.PRNGKey(seed)

    def __call__(self):
        self.key, sub = jax.random.split(self.key)
        return sub


def conv_w(kg, cout, cin, k):
    return 0.1 * jax.random.normal(kg(), (cout, cin, k, k), jnp.float32)


def bn_params(kg, c):
    return dict(
        gamma=1.0 + 0.05 * jax.random.normal(kg(), (c,), jnp.float32),
        beta=0.05 * jax.random.normal(kg(), (c,), jnp.float32),
        mean=0.05 * jax.random.normal(kg(), (c,), jnp.float32),
        var=jax.random.uniform(kg(), (c,), jnp.float32, 0.5, 1.5),
    )


def build_block(kg, ba, eps):
    inp = ba.input_filters
    oup = inp * ba.expand_ratio
    bp = {"args": ba}
    if ba.expand_ratio != 1:
        w = conv_w(kg, oup, inp, 1).reshape(oup, inp).T        # (inp, oup)
        s, b = fold_bn(bn_params(kg, oup), eps)
        bp["expand_w"] = (w * s[None, :]).astype(jnp.bfloat16)
        bp["expand_b"] = b[None, :]
    k = ba.kernel_size
    dw = 0.1 * jax.random.normal(kg(), (oup, 1, k, k), jnp.float32)
    dw2 = jnp.transpose(dw, (2, 3, 0, 1)).reshape(k * k, oup)
    s, b = fold_bn(bn_params(kg, oup), eps)
    dw2 = dw2 * s[None, :]
    bp["dw_w"] = dw2.astype(jnp.bfloat16) if _BF16_VPU else dw2
    bp["dw_b"] = b[None, :]
    bp["has_se"] = ba.se_ratio is not None and 0 < ba.se_ratio <= 1
    if bp["has_se"]:
        nsq = max(1, int(inp * ba.se_ratio))
        bp["se_r_w"] = conv_w(kg, nsq, oup, 1).reshape(nsq, oup).T
        bp["se_r_b"] = (0.05 * jax.random.normal(kg(), (nsq,), jnp.float32))[None, :]
        bp["se_e_w"] = conv_w(kg, oup, nsq, 1).reshape(oup, nsq).T
        bp["se_e_b"] = (0.05 * jax.random.normal(kg(), (oup,), jnp.float32))[None, :]
    w = conv_w(kg, ba.output_filters, oup, 1).reshape(ba.output_filters, oup).T
    s, b = fold_bn(bn_params(kg, ba.output_filters), eps)
    bp["proj_w"] = (w * s[None, :]).astype(jnp.bfloat16)
    bp["proj_b"] = b[None, :]
    return bp


def build_params(blocks_args, gp, seed=0):
    kg = KeyGen(seed)
    eps = gp.batch_norm_epsilon
    params = {"gp": gp}

    stem_out = round_filters(32, gp)
    w = conv_w(kg, stem_out, 3, 3)                             # (Cout, Cin, kh, kw)
    w = jnp.transpose(w, (2, 3, 1, 0)).reshape(3 * 3 * 3, stem_out)
    s, b = fold_bn(bn_params(kg, stem_out), eps)
    params["stem_w"] = (w * s[None, :]).astype(jnp.bfloat16)
    params["stem_b"] = b[None, :]

    blocks = []
    for ba in blocks_args:
        ba = ba._replace(input_filters=round_filters(ba.input_filters, gp),
                         output_filters=round_filters(ba.output_filters, gp),
                         num_repeat=round_repeats(ba.num_repeat, gp))
        blocks.append(build_block(kg, ba, eps))
        if ba.num_repeat > 1:
            ba = ba._replace(input_filters=ba.output_filters, stride=1)
        for _ in range(ba.num_repeat - 1):
            blocks.append(build_block(kg, ba, eps))
    params["blocks"] = blocks

    last_out = blocks[-1]["args"].output_filters
    head_out = round_filters(1280, gp)
    w = conv_w(kg, head_out, last_out, 1).reshape(head_out, last_out).T
    s, b = fold_bn(bn_params(kg, head_out), eps)
    params["head_w"] = (w * s[None, :]).astype(jnp.bfloat16)
    params["head_b"] = b[None, :]
    params["fc_w"] = (0.05 * jax.random.normal(kg(), (gp.num_classes, head_out), jnp.float32)).T
    params["fc_b"] = (0.05 * jax.random.normal(kg(), (gp.num_classes,), jnp.float32))[None, :]
    return params


# ----------------------------- forward pass -----------------------------

def mbconv_forward(x, bp):
    args = bp["args"]
    n, h, wd, cin = x.shape
    inputs = x

    if args.expand_ratio != 1:
        y2 = matmul_bn_act(x.reshape(n * h * wd, cin), bp["expand_w"], bp["expand_b"],
                           activation="swish")
        x = y2.reshape(n, h, wd, -1)

    k, st = args.kernel_size, args.stride
    x, sq = dwconv_bn_swish_pool(x, bp["dw_w"], bp["dw_b"], k, st)
    n2, oh, ow, cmid = x.shape

    gate = se_forward(sq, bp) if bp["has_se"] else None          # (N, cmid) pre-sigmoid

    skip3 = None
    if args.id_skip and st == 1 and args.input_filters == args.output_filters:
        # drop_connect is identity in eval mode
        skip3 = inputs.reshape(n, h * wd, cin)

    y3 = proj_conv(x.reshape(n2, oh * ow, cmid), bp["proj_w"], bp["proj_b"],
                   gate=gate, skip3=skip3)
    return y3.reshape(n2, oh, ow, -1)


def efficientnet_forward(params, x_nchw):
    x = jnp.transpose(x_nchw, (0, 2, 3, 1)).astype(jnp.bfloat16)   # NCHW -> NHWC, bf16
    n = x.shape[0]

    # stem: 3x3 stride-2 SAME conv via im2col + fused matmul/BN/swish (batch-collapsed M)
    p3, oh, ow = im2col(x, 3, 2)
    y = matmul_bn_act(p3.reshape(n * oh * ow, -1), params["stem_w"], params["stem_b"],
                      activation="swish")
    x = y.reshape(n, oh, ow, -1)

    for bp in params["blocks"]:
        x = mbconv_forward(x, bp)

    # head 1x1 conv + BN + swish + global average pool, fused (head activation never hits HBM)
    nb, h, w, c = x.shape
    pooled = head_pool(x.reshape(nb, h * w, c), params["head_w"], params["head_b"])

    # (identity dropout in eval) + final Linear
    logits = pl.pallas_call(
        _fc_kernel,
        out_shape=jax.ShapeDtypeStruct((nb, params["fc_w"].shape[1]), jnp.float32),
        compiler_params=pltpu.CompilerParams(vmem_limit_bytes=_VMEM_LIMIT),
    )(pooled, params["fc_w"], params["fc_b"])
    return logits


# ----------------------------- main -----------------------------

if __name__ == "__main__":
    gp = GlobalParams(batch_norm_momentum=0.99, batch_norm_epsilon=1e-3,
                      dropout_rate=0.2, drop_connect_rate=0.2, num_classes=10,
                      width_coefficient=0.25, depth_coefficient=1.0,
                      depth_divisor=8, min_depth=None, image_size=32)
    # Small b0-style stack: stride-1 k3 block, two stride-2/1 k3 blocks, one stride-2 k5 block.
    blocks_args = [
        BlockArgs(num_repeat=1, kernel_size=3, stride=1, expand_ratio=1,
                  input_filters=32, output_filters=16, se_ratio=0.25, id_skip=True),
        BlockArgs(num_repeat=2, kernel_size=3, stride=2, expand_ratio=6,
                  input_filters=16, output_filters=24, se_ratio=0.25, id_skip=True),
        BlockArgs(num_repeat=1, kernel_size=5, stride=2, expand_ratio=6,
                  input_filters=24, output_filters=40, se_ratio=0.25, id_skip=True),
    ]

    params = build_params(blocks_args, gp, seed=0)
    x = jax.random.normal(jax.random.PRNGKey(0), (2, 3, 32, 32), jnp.float32)   # NCHW like PyTorch

    logits = efficientnet_forward(params, x)
    jax.block_until_ready(logits)
    assert logits.shape == (2, gp.num_classes), logits.shape
    assert bool(jnp.all(jnp.isfinite(logits)))
    print("KERNEL_OK")
</pallas_src>

<mosaic_0001>
module attributes {stable_mosaic.version = 11 : i64} {
  func.func @_mm_kernel(%arg0: i32, %arg1: memref<512x27xbf16, #tpu.memory_space<vmem>>, %arg2: memref<27x8xbf16, #tpu.memory_space<vmem>>, %arg3: memref<1x8xf32, #tpu.memory_space<vmem>>, %arg4: memref<512x8xbf16, #tpu.memory_space<vmem>>) attributes {dimension_semantics = [#tpu.dimension_semantics<parallel>], iteration_bounds = array<i64: 1>, scalar_prefetch = 0 : i64, scratch_operands = 0 : i64, tpu.core_type = #tpu.core_type<tc>, window_params = [{transform_indices = @transform_0, window_bounds = array<i64: 512, 27>}, {pipeline_mode = #tpu.pipeline_mode<synchronous>, transform_indices = @transform_1, window_bounds = array<i64: 27, 8>}, {pipeline_mode = #tpu.pipeline_mode<synchronous>, transform_indices = @transform_2, window_bounds = array<i64: 1, 8>}, {transform_indices = @transform_3, window_bounds = array<i64: 512, 8>}]} {
    %c0 = arith.constant 0 : index
    %c0_0 = arith.constant 0 : index
    %0 = vector.load %arg1[%c0, %c0_0] : memref<512x27xbf16, #tpu.memory_space<vmem>>, vector<512x27xbf16>
    %c0_1 = arith.constant 0 : index
    %c0_2 = arith.constant 0 : index
    %1 = vector.load %arg2[%c0_1, %c0_2] : memref<27x8xbf16, #tpu.memory_space<vmem>>, vector<27x8xbf16>
    %cst = arith.constant dense<0.000000e+00> : vector<512x8xf32>
    %2 = tpu.matmul %0, %1, %cst {dimension_numbers = #tpu.dot_dimension_numbers<[1], [0], [0], [1], [0, 0, 1, 1], [], []>} : vector<512x27xbf16>, vector<27x8xbf16>, vector<512x8xf32> -> vector<512x8xf32>
    %c0_3 = arith.constant 0 : index
    %c0_4 = arith.constant 0 : index
    %3 = vector.load %arg3[%c0_3, %c0_4] : memref<1x8xf32, #tpu.memory_space<vmem>>, vector<1x8xf32>
    %4 = vector.broadcast %3 : vector<1x8xf32> to vector<512x8xf32>
    %5 = arith.addf %2, %4 : vector<512x8xf32>
    %6 = arith.negf %5 : vector<512x8xf32>
    %7 = math.exp %6 : vector<512x8xf32>
    %cst_5 = arith.constant 1.000000e+00 : f32
    %8 = vector.broadcast %cst_5 : f32 to vector<512x8xf32>
    %9 = arith.addf %8, %7 : vector<512x8xf32>
    %10 = arith.divf %8, %9 : vector<512x8xf32>
    %11 = arith.mulf %5, %10 : vector<512x8xf32>
    %12 = arith.truncf %11 : vector<512x8xf32> to vector<512x8xbf16>
    %c0_6 = arith.constant 0 : index
    %c0_7 = arith.constant 0 : index
    %13 = vector.load %arg4[%c0_6, %c0_7] : memref<512x8xbf16, #tpu.memory_space<vmem>>, vector<512x8xbf16>
    tpu.vector_store %arg4[%c0_6, %c0_7], %12 {strides = array<i32>} : memref<512x8xbf16, #tpu.memory_space<vmem>>, vector<512x8xbf16>,
    return
  }
  func.func @transform_0(%arg0: i32) -> (i32, i32) {
    %c0_i32 = arith.constant 0 : i32
    %c0_i32_0 = arith.constant 0 : i32
    return %arg0, %c0_i32 : i32, i32
  }
  func.func @transform_1(%arg0: i32) -> (i32, i32) {
    %c0_i32 = arith.constant 0 : i32
    %c0_i32_0 = arith.constant 0 : i32
    %c0_i32_1 = arith.constant 0 : i32
    return %c0_i32, %c0_i32_0 : i32, i32
  }
  func.func @transform_2(%arg0: i32) -> (i32, i32) {
    %c0_i32 = arith.constant 0 : i32
    %c0_i32_0 = arith.constant 0 : i32
    %c0_i32_1 = arith.constant 0 : i32
    return %c0_i32, %c0_i32_0 : i32, i32
  }
  func.func @transform_3(%arg0: i32) -> (i32, i32) {
    %c0_i32 = arith.constant 0 : i32
    %c0_i32_0 = arith.constant 0 : i32
    return %arg0, %c0_i32 : i32, i32
  }
}

</mosaic_0001>

<bundles_post_ra>
// kernel: tpu_custom_call.1
= control target key start
LH: loop header
LB: loop body
LE: loop exit
PB: predicated region body
PF: predicated region fallthrough
CT: control target
= control target key end

     0   :  { %vm355_vm0 = vcmask 1044480   ;;  %vm356_vm1 = vcmask 1045504   ;;  %v2476_v2 = vmov 65535   ;;  %vm258_vm2 = vcmask 220160   ;;  %s4116_s1 = inlined_call_operand.vmem [shape: bf16[27,8], index: 1, kind: input, shape index: {}]   ;;  %s4117_s2 = inlined_call_operand.vmem [shape: f32[1,8], index: 2, kind: input, shape index: {}]   ;;  %s4118_s0 = inlined_call_operand.vmem [shape: bf16[512,27], index: 0, kind: input, shape index: {}]   ;;  %s4119_s3 = inlined_call_operand.vmem [shape: bf16[512,8], index: 3, kind: output, shape index: {}]  }
   0x1   :  { %v2078_v0 = vld [vmem:[%s4116_s1 + $0x8] sm:$0xf]  ;;  %v2209_v1 = vld [vmem:[%s4116_s1 + $0x8] sm:$0x30]  ;;  %v357_v3 = vsel %vm355_vm0, 4294967295, %v2476_v2  ;;  %v2208_v7 = vld [vmem:[%s4116_s1] sm:$0xff] }
   0x2   :  { %v2079_v4 = vor.u32 %v2209_v1, %v2078_v0  ;;  %v358_v5 = vsel %vm356_vm1, %v357_v3, 0  ;;  %v2176_v8 = vld [vmem:[%s4118_s0] sm:$0xff]  ;;  %v2177_v12 = vld [vmem:[%s4118_s0 + $0x8] sm:$0xff]  ;;  %v2178_v16 = vld [vmem:[%s4118_s0 + $0x10] sm:$0xff]  ;;  %vm1875_vm8 = vcmask 60416  }
   0x3   :  { %v2184_v9 = vld [vmem:[%s4118_s0 + $0x40] sm:$0xff]  ;;  %v2185_v13 = vld [vmem:[%s4118_s0 + $0x48] sm:$0xff]  ;;  %v2186_v17 = vld [vmem:[%s4118_s0 + $0x50] sm:$0xff] }
   0x4   :  { %v360_v6 = vand.u32 %v2079_v4, %v358_v5  ;;  %v2192_v10 = vld [vmem:[%s4118_s0 + $0x80] sm:$0xff]  ;;  %v2193_v14 = vld [vmem:[%s4118_s0 + $0x88] sm:$0xff]  ;;  %v2194_v18 = vld [vmem:[%s4118_s0 + $0x90] sm:$0xff] }
   0x5   :  { %v2200_v11 = vld [vmem:[%s4118_s0 + $0xc0] sm:$0xff]  ;;  %v2201_v15 = vld [vmem:[%s4118_s0 + $0xc8] sm:$0xff]  ;;  %v2202_v19 = vld [vmem:[%s4118_s0 + $0xd0] sm:$0xff] }
   0x6   :  { %368 = vmatpush.bf16.msra.mxu0 %v360_v6  ;;  %2210 = vmatpush.bf16.msra.mxu1 %v360_v6  ;;  %v2179_v20 = vld [vmem:[%s4118_s0 + $0x18] sm:$0xff]  ;;  %v2180_v24 = vld [vmem:[%s4118_s0 + $0x20] sm:$0xff]  ;;  %v2181_v28 = vld [vmem:[%s4118_s0 + $0x28] sm:$0xff] }
   0x7   :  { %2211 = vmatpush.bf16.msra.mxu2 %v360_v6  ;;  %2212 = vmatpush.bf16.msra.mxu3 %v360_v6  ;;  %v2187_v21 = vld [vmem:[%s4118_s0 + $0x58] sm:$0xff]  ;;  %v2188_v25 = vld [vmem:[%s4118_s0 + $0x60] sm:$0xff]  ;;  %v2189_v29 = vld [vmem:[%s4118_s0 + $0x68] sm:$0xff] }
   0x8   :  { %v2195_v22 = vld [vmem:[%s4118_s0 + $0x98] sm:$0xff]  ;;  %v2196_v26 = vld [vmem:[%s4118_s0 + $0xa0] sm:$0xff]  ;;  %v2197_v30 = vld [vmem:[%s4118_s0 + $0xa8] sm:$0xff] }
   0x9   :  { %v2203_v23 = vld [vmem:[%s4118_s0 + $0xd8] sm:$0xff]  ;;  %v2204_v27 = vld [vmem:[%s4118_s0 + $0xe0] sm:$0xff]  ;;  %v2205_v31 = vld [vmem:[%s4118_s0 + $0xe8] sm:$0xff] }
   0xa   :  { %369 = vmatpush.bf16.msra.mxu0 %v2208_v7  ;;  %2213 = vmatpush.bf16.msra.mxu1 %v2208_v7  ;;  %v2182_v32 = vld [vmem:[%s4118_s0 + $0x30] sm:$0xff]  ;;  %v2183_v36 = vld [vmem:[%s4118_s0 + $0x38] sm:$0xff]  ;;  %v2637_v40 = vld [vmem:[%s4117_s2] ss:$0 sm:$0xff] }
   0xb   :  { %2214 = vmatpush.bf16.msra.mxu2 %v2208_v7  ;;  %2215 = vmatpush.bf16.msra.mxu3 %v2208_v7  ;;  %v2190_v33 = vld [vmem:[%s4118_s0 + $0x70] sm:$0xff]  ;;  %v2191_v37 = vld [vmem:[%s4118_s0 + $0x78] sm:$0xff] }
   0xc   :  { %v2198_v34 = vld [vmem:[%s4118_s0 + $0xb0] sm:$0xff]  ;;  %v2199_v38 = vld [vmem:[%s4118_s0 + $0xb8] sm:$0xff] }
   0xd   :  { %2080 = vmatmul.msk.bf16.vlgmr.msra.gmra.mxu0 %vm258_vm2, %v2176_v8  ;;  %2088 = vmatmul.msk.bf16.vlgmr.msra.gmra.mxu1 %vm258_vm2, %v2184_v9  ;;  %v2206_v35 = vld [vmem:[%s4118_s0 + $0xf0] sm:$0xff]  ;;  %v2207_v39 = vld [vmem:[%s4118_s0 + $0xf8] sm:$0xff] }
   0xe   :  { %2096 = vmatmul.msk.bf16.vlgmr.msra.gmra.mxu2 %vm258_vm2, %v2192_v10  ;;  %2104 = vmatmul.msk.bf16.vlgmr.msra.gmra.mxu3 %vm258_vm2, %v2200_v11 }
  0x1d   :  { %2081 = vmatmul.msk.bf16.gmra.mxu0 %vm258_vm2, %v2177_v12  ;;  %2089 = vmatmul.msk.bf16.gmra.mxu1 %vm258_vm2, %v2185_v13 }
  0x1e   :  { %2097 = vmatmul.msk.bf16.gmra.mxu2 %vm258_vm2, %v2193_v14  ;;  %2105 = vmatmul.msk.bf16.gmra.mxu3 %vm258_vm2, %v2201_v15 }
  0x2d   :  { %2082 = vmatmul.msk.bf16.gmra.mxu0 %vm258_vm2, %v2178_v16  ;;  %2090 = vmatmul.msk.bf16.gmra.mxu1 %vm258_vm2, %v2186_v17 }
  0x2e   :  { %2098 = vmatmul.msk.bf16.gmra.mxu2 %vm258_vm2, %v2194_v18  ;;  %2106 = vmatmul.msk.bf16.gmra.mxu3 %vm258_vm2, %v2202_v19 }
  0x3d   :  { %2083 = vmatmul.msk.bf16.gmra.mxu0 %vm258_vm2, %v2179_v20  ;;  %2091 = vmatmul.msk.bf16.gmra.mxu1 %vm258_vm2, %v2187_v21 }
  0x3e   :  { %2099 = vmatmul.msk.bf16.gmra.mxu2 %vm258_vm2, %v2195_v22  ;;  %2107 = vmatmul.msk.bf16.gmra.mxu3 %vm258_vm2, %v2203_v23 }
  0x4d   :  { %2084 = vmatmul.msk.bf16.gmra.mxu0 %vm258_vm2, %v2180_v24  ;;  %2092 = vmatmul.msk.bf16.gmra.mxu1 %vm258_vm2, %v2188_v25 }
  0x4e   :  { %2100 = vmatmul.msk.bf16.gmra.mxu2 %vm258_vm2, %v2196_v26  ;;  %2108 = vmatmul.msk.bf16.gmra.mxu3 %vm258_vm2, %v2204_v27 }
  0x5d   :  { %2085 = vmatmul.msk.bf16.gmra.mxu0 %vm258_vm2, %v2181_v28  ;;  %2093 = vmatmul.msk.bf16.gmra.mxu1 %vm258_vm2, %v2189_v29 }
  0x5e   :  { %2101 = vmatmul.msk.bf16.gmra.mxu2 %vm258_vm2, %v2197_v30  ;;  %2109 = vmatmul.msk.bf16.gmra.mxu3 %vm258_vm2, %v2205_v31 }
  0x6d   :  { %2086 = vmatmul.msk.bf16.gmra.mxu0 %vm258_vm2, %v2182_v32  ;;  %2094 = vmatmul.msk.bf16.gmra.mxu1 %vm258_vm2, %v2190_v33 }
  0x6e   :  { %2102 = vmatmul.msk.bf16.gmra.mxu2 %vm258_vm2, %v2198_v34  ;;  %2110 = vmatmul.msk.bf16.gmra.mxu3 %vm258_vm2, %v2206_v35 }
  0x7d   :  { %2087 = vmatmul.msk.bf16.gmra.mxu0 %vm258_vm2, %v2183_v36  ;;  %2095 = vmatmul.msk.bf16.gmra.mxu1 %vm258_vm2, %v2191_v37 }
  0x7e   :  { %2103 = vmatmul.msk.bf16.gmra.mxu2 %vm258_vm2, %v2199_v38  ;;  %2111 = vmatmul.msk.bf16.gmra.mxu3 %vm258_vm2, %v2207_v39 }
  0x8a   :  { %v371_v41 = vpop.f32.mrf.mxu0  ;;  %v411_v42 = vpop.f32.mrf.mxu1 }
  0x8b   :  { %v2640_v43 = vadd.f32 %v2637_v40, %v371_v41  ;;  %v2643_v44 = vadd.f32 %v2637_v40, %v411_v42 }
  0x8d   :  { %v2112_v45 = vmul.f32 -1.442695, %v2640_v43  ;;  %v2128_v46 = vmul.f32 -1.442695, %v2643_v44 }
  0x8f   :  { %2218 = vpow2.f32 %v2112_v45 }
  0x90   :  { %2220 = vpow2.f32 %v2128_v46 }
  0x91   :  { %v451_v47 = vpop.f32.mrf.mxu2  ;;  %v491_v48 = vpop.f32.mrf.mxu3 }
  0x92   :  { %v2648_v49 = vadd.f32 %v2637_v40, %v451_v47  ;;  %v2651_v50 = vadd.f32 %v2637_v40, %v491_v48  ;;  %v373_v51 = vpop.f32.mrf.mxu0  ;;  %v413_v52 = vpop.f32.mrf.mxu1 }
  0x93   :  { %v2654_v53 = vadd.f32 %v2637_v40, %v373_v51  ;;  %v2657_v54 = vadd.f32 %v2637_v40, %v413_v52 }
  0x94   :  { %v2144_v55 = vmul.f32 -1.442695, %v2648_v49  ;;  %v2160_v56 = vmul.f32 -1.442695, %v2651_v50 }
  0x95   :  { %v2219_v57 = vpop.eup %2218  ;;  %v2113_v60 = vmul.f32 -1.442695, %v2654_v53  ;;  %v2129_v62 = vmul.f32 -1.442695, %v2657_v54 }
  0x96   :  { %v2221_v58 = vpop.eup %2220  ;;  %v2661_v59 = vadd.f32 1.0, %v2219_v57  ;;  %2222 = vpow2.f32 %v2144_v55 }
  0x97   :  { %v2664_v61 = vadd.f32 1.0, %v2221_v58  ;;  %2224 = vpow2.f32 %v2160_v56 }
  0x98   :  { %2226 = vrcp.f32 %v2661_v59  ;;  %v796_v3 = vand.u32 2147483647, %v2661_v59  ;;  %v798_v4 = vand.u32 2147483648, %v2661_v59  ;;  %vm792_vm3 = vweird.f32 %v2661_v59 }
  0x99   :  { %2228 = vrcp.f32 %v2664_v61  ;;  %v453_v63 = vpop.f32.mrf.mxu2  ;;  %v493_v0 = vpop.f32.mrf.mxu3  ;;  %v1036_v7 = vand.u32 2147483647, %v2664_v61  ;;  %v1038_v11 = vand.u32 2147483648, %v2664_v61  ;;  %vm1032_vm4 = vweird.f32 %v2664_v61 }
  0x9a   :  { %2230 = vpow2.f32 %v2113_v60  ;;  %v2670_v1 = vadd.f32 %v2637_v40, %v453_v63  ;;  %v376_v2 = vpop.f32.mrf.mxu0  ;;  %v416_v5 = vpop.f32.mrf.mxu1  ;;  %v2677_v9 = vadd.f32 %v2637_v40, %v493_v0  ;;  %vm2693_vm5 = vcmp.eq.f32.partialorder %v796_v3, 8.507059e+37 }
  0x9b   :  { %2232 = vpow2.f32 %v2129_v62  ;;  %v2683_v13 = vadd.f32 %v2637_v40, %v376_v2  ;;  %v2690_v16 = vadd.f32 %v2637_v40, %v416_v5  ;;  %v799_v20 = vor.u32 1.1754944e-38, %v798_v4 }
  0x9c   :  { %v2223_v6 = vpop.eup %2222  ;;  %v2145_v8 = vmul.f32 -1.442695, %v2670_v1  ;;  %vm2699_vm6 = vcmp.eq.f32.partialorder %v1036_v7, 8.507059e+37  ;;  %v2161_v24 = vmul.f32 -1.442695, %v2677_v9  ;;  %v1039_v27 = vor.u32 1.1754944e-38, %v1038_v11 }
  0x9d   :  { %v2225_v10 = vpop.eup %2224  ;;  %v2680_v12 = vadd.f32 1.0, %v2223_v6  ;;  %v2706_v28 = vmul.f32 -1.442695, %v2683_v13  ;;  %v2710_v31 = vmul.f32 -1.442695, %v2690_v16 }
  0x9e   :  { %v2227_v14 = vpop.eup %2226  ;;  %v2687_v15 = vadd.f32 1.0, %v2225_v10 }
  0x9f   :  { %v2229_v17 = vpop.eup %2228  ;;  %v788_v18 = vmul.f32 %v2227_v14, %v2661_v59  ;;  %2234 = vrcp.f32 %v2680_v12  ;;  %vm793_vm7 = vweird.f32 %v2227_v14  ;;  %v1276_v30 = vand.u32 2147483647, %v2680_v12 }
  0xa0   :  { %v2231_v21 = vpop.eup %2230  ;;  %v1028_v22 = vmul.f32 %v2229_v17, %v2664_v61  ;;  %2236 = vpow2.f32 %v2145_v8  ;;  %v1278_v33 = vand.u32 2147483648, %v2680_v12  ;;  %vm1033_vm9 = vweird.f32 %v2229_v17  ;;  %vm794_vm11 = vmor %vm792_vm3, %vm793_vm7 }
  0xa1   :  { %v2233_v25 = vpop.eup %2232  ;;  %v789_v26 = vsub.f32 1.0, %v788_v18  ;;  %2238 = vrcp.f32 %v2687_v15  ;;  %v2713_v34 = vadd.f32 1.0, %v2231_v21  ;;  %v1516_v37 = vand.u32 2147483647, %v2687_v15  ;;  %v456_v48 = vpop.f32.mrf.mxu2  ;;  %vm1034_vm14 = vmor %vm1032_vm4, %vm1033_vm9 }
  0xa2   :  { %v1029_v29 = vsub.f32 1.0, %v1028_v22  ;;  %v2715_v35 = vadd.f32 1.0, %v2233_v25  ;;  %2240 = vpow2.f32 %v2161_v24  ;;  %vm1272_vm10 = vweird.f32 %v2680_v12 }
  0xa3   :  { %v790_v32 = vmul.f32 %v2227_v14, %v789_v26  ;;  %v1518_v41 = vand.u32 2147483648, %v2687_v15  ;;  %2242 = vrcp.f32 %v2713_v34  ;;  %vm2725_vm12 = vcmp.eq.f32.partialorder %v1276_v30, 8.507059e+37 }
  0xa4   :  { %v1030_v36 = vmul.f32 %v2229_v17, %v1029_v29  ;;  %vm1512_vm13 = vweird.f32 %v2687_v15  ;;  %v1279_v55 = vor.u32 1.1754944e-38, %v1278_v33  ;;  %v811_v56 = vand.u32 2147483647, %v2713_v34 }
  0xa5   :  { %v2235_v38 = vpop.eup %2234  ;;  %v791_v39 = vadd.f32 %v2227_v14, %v790_v32  ;;  %2244 = vrcp.f32 %v2715_v35  ;;  %vm2738_vm15 = vcmp.eq.f32.partialorder %v1516_v37, 8.507059e+37  ;;  %v1519_v0 = vor.u32 1.1754944e-38, %v1518_v41 }
  0xa6   :  { %v2237_v42 = vpop.eup %2236  ;;  %v1031_v45 = vadd.f32 %v2229_v17, %v1030_v36  ;;  %v1268_v46 = vmul.f32 %v2235_v38, %v2680_v12  ;;  %v2746_v2 = vadd.f32 %v2637_v40, %v456_v48  ;;  %vm1273_vm0 = vweird.f32 %v2235_v38 }
  0xa7   :  { %v2239_v51 = vpop.eup %2238  ;;  %v795_v52 = vsel %vm794_vm11, %v2227_v14, %v791_v39  ;;  %vm807_vm1 = vweird.f32 %v2713_v34  ;;  %v2751_v10 = vadd.f32 1.0, %v2237_v42  ;;  %vm2754_vm3 = vcmp.eq.f32.partialorder %v811_v56, 8.507059e+37  ;;  %vm1274_vm4 = vmor %vm1272_vm10, %vm1273_vm0 }
  0xa8   :  { %v800_v57 = vsel %vm2693_vm5, %v799_v20, %v795_v52  ;;  %v1035_v58 = vsel %vm1034_vm14, %v2229_v17, %v1031_v45  ;;  %v1269_v59 = vsub.f32 1.0, %v1268_v46  ;;  %v1508_v60 = vmul.f32 %v2239_v51, %v2687_v15  ;;  %v2241_v3 = vpop.eup %2240 }
  0xa9   :  { %v1747_v63 = vmul.f32 %v800_v57, %v2640_v43  ;;  %v1040_v61 = vsel %vm2699_vm6, %v1039_v27, %v1035_v58  ;;  %v2243_v7 = vpop.eup %2242  ;;  %vm1513_vm2 = vweird.f32 %v2239_v51  ;;  %v813_v43 = vand.u32 2147483648, %v2713_v34 }
  0xaa   :  { %v1763_v4 = vmul.f32 %v1040_v61, %v2643_v44  ;;  %v1270_v5 = vmul.f32 %v2235_v38, %v1269_v59  ;;  %v1509_v6 = vsub.f32 1.0, %v1508_v60  ;;  %v803_v18 = vmul.f32 %v2243_v7, %v2713_v34  ;;  %vm1514_vm6 = vmor %vm1512_vm13, %vm1513_vm2  ;;  %v496_v34 = vpop.f32.mrf.mxu3  ;;  %v378_v60 = vpop.f32.mrf.mxu0 }
  0xab   :  { %v1811_v8 = vpack.c.bf16 %v1747_v63, %v1747_v63  ;;  %v2245_v44 = vpop.eup %2244  ;;  %vm1047_vm5 = vweird.f32 %v2715_v35  ;;  %v1051_v20 = vand.u32 2147483647, %v2715_v35  ;;  %2246 = vrcp.f32 %v2751_v10 }
  0xac   :  { %v1827_v11 = vpack.c.bf16 %v1763_v4, %v1763_v4  ;;  %v1271_v14 = vadd.f32 %v2235_v38, %v1270_v5  ;;  %v1510_v17 = vmul.f32 %v2239_v51, %v1509_v6  ;;  %v2768_v21 = vadd.f32 1.0, %v2241_v3 }
  0xad   :  { %1876 = vst.msk [vmem:[%s4119_s3] sm:$0xf] %vm1875_vm8, %v1811_v8  ;;  %v804_v24 = vsub.f32 1.0, %v803_v18  ;;  %v1043_v25 = vmul.f32 %v2245_v44, %v2715_v35  ;;  %vm808_vm7 = vweird.f32 %v2243_v7  ;;  %vm1048_vm9 = vweird.f32 %v2245_v44 }
  0xae   :  { %1892 = vst.msk [vmem:[%s4119_s3 + $0x40] sm:$0xf] %vm1875_vm8, %v1827_v11  ;;  %v1275_v22 = vsel %vm1274_vm4, %v2235_v38, %v1271_v14  ;;  %v1511_v23 = vadd.f32 %v2239_v51, %v1510_v17  ;;  %v1053_v26 = vand.u32 2147483648, %v2715_v35  ;;  %v1291_v36 = vand.u32 2147483647, %v2751_v10  ;;  %vm809_vm10 = vmor %vm807_vm1, %vm808_vm7 }
  0xaf   :  { %v1280_v12 = vsel %vm2725_vm12, %v1279_v55, %v1275_v22  ;;  %v805_v30 = vmul.f32 %v2243_v7, %v804_v24  ;;  %v1044_v32 = vsub.f32 1.0, %v1043_v25  ;;  %v1293_v37 = vand.u32 2147483648, %v2751_v10  ;;  %vm1049_vm13 = vmor %vm1047_vm5, %vm1048_vm9 }
  0xb0   :  { %v1779_v27 = vmul.f32 %v1280_v12, %v2648_v49  ;;  %v1515_v29 = vsel %vm1514_vm6, %v2239_v51, %v1511_v23  ;;  %2248 = vrcp.f32 %v2768_v21  ;;  %v814_v49 = vor.u32 1.1754944e-38, %v813_v43  ;;  %v458_v43 = vpop.f32.mrf.mxu2 }
  0xb1   :  { %v1520_v33 = vsel %vm2738_vm15, %v1519_v0, %v1515_v29  ;;  %v806_v39 = vadd.f32 %v2243_v7, %v805_v30  ;;  %v1045_v41 = vmul.f32 %v2245_v44, %v1044_v32  ;;  %v2247_v42 = vpop.eup %2246  ;;  %vm2791_vm11 = vcmp.eq.f32.partialorder %v1051_v20, 8.507059e+37  ;;  %v418_v0 = vpop.f32.mrf.mxu1 }
  0xb2   :  { %v1843_v15 = vpack.c.bf16 %v1779_v27, %v1779_v27  ;;  %v1795_v38 = vmul.f32 %v1520_v33, %v2651_v50  ;;  %v1054_v46 = vor.u32 1.1754944e-38, %v1053_v26  ;;  %vm1287_vm12 = vweird.f32 %v2751_v10  ;;  %v498_v27 = vpop.f32.mrf.mxu3 }
  0xb3   :  { %v810_v47 = vsel %vm809_vm10, %v2243_v7, %v806_v39  ;;  %v1046_v48 = vadd.f32 %v2245_v44, %v1045_v41  ;;  %v1283_v51 = vmul.f32 %v2247_v42, %v2751_v10  ;;  %vm1288_vm14 = vweird.f32 %v2247_v42 }
  0xb4   :  { %1908 = vst.msk [vmem:[%s4119_s3 + $0x80] sm:$0xf] %vm1875_vm8, %v1843_v15  ;;  %v1859_v50 = vpack.c.bf16 %v1795_v38, %v1795_v38  ;;  %v815_v52 = vsel %vm2754_vm3, %v814_v49, %v810_v47  ;;  %vm2806_vm15 = vcmp.eq.f32.partialorder %v1291_v36, 8.507059e+37  ;;  %v1294_v56 = vor.u32 1.1754944e-38, %v1293_v37  ;;  %vm1289_vm1 = vmor %vm1287_vm12, %vm1288_vm14  ;;  %v381_v36 = vpop.f32.mrf.mxu0 }
  0xb5   :  { %v1748_v57 = vmul.f32 %v815_v52, %v2654_v53  ;;  %v1050_v58 = vsel %vm1049_vm13, %v2245_v44, %v1046_v48  ;;  %v1284_v59 = vsub.f32 1.0, %v1283_v51  ;;  %2250 = vpow2.f32 %v2706_v28 }
  0xb6   :  { %1924 = vst.msk [vmem:[%s4119_s3 + $0xc0] sm:$0xf] %vm1875_vm8, %v1859_v50  ;;  %v2249_v35 = vpop.eup %2248  ;;  %v1055_v62 = vsel %vm2791_vm11, %v1054_v46, %v1050_v58  ;;  %2252 = vpow2.f32 %v2710_v31  ;;  %v2146_v63 = vmul.f32 -1.442695, %v2746_v2  ;;  %v2821_v61 = vadd.f32 %v2637_v40, %v496_v34 }
  0xb7   :  { %v1812_v3 = vpack.c.bf16 %v1748_v57, %v1748_v57  ;;  %v1764_v53 = vmul.f32 %v1055_v62, %v2657_v54  ;;  %v1285_v4 = vmul.f32 %v2247_v42, %v1284_v59  ;;  %v1523_v5 = vmul.f32 %v2249_v35, %v2768_v21 }
  0xb8   :  { %vm1527_vm0 = vweird.f32 %v2768_v21  ;;  %2254 = vpow2.f32 %v2146_v63  ;;  %v2162_v28 = vmul.f32 -1.442695, %v2821_v61  ;;  %v2828_v6 = vadd.f32 %v2637_v40, %v378_v60 }
  0xb9   :  { %1877 = vst.msk [vmem:[%s4119_s3 + $0x4] sm:$0xf] %vm1875_vm8, %v1812_v3  ;;  %v1828_v31 = vpack.c.bf16 %v1764_v53, %v1764_v53  ;;  %v1286_v7 = vadd.f32 %v2247_v42, %v1285_v4  ;;  %v1524_v8 = vsub.f32 1.0, %v1523_v5  ;;  %v2835_v54 = vadd.f32 %v2637_v40, %v418_v0 }
  0xba   :  { %v1531_v11 = vand.u32 2147483647, %v2768_v21  ;;  %v1533_v14 = vand.u32 2147483648, %v2768_v21  ;;  %2256 = vpow2.f32 %v2162_v28  ;;  %v2115_v17 = vmul.f32 -1.442695, %v2828_v6 }
  0xbb   :  { %v2251_v18 = vpop.eup %2250  ;;  %1893 = vst.msk [vmem:[%s4119_s3 + $0x44] sm:$0xf] %vm1875_vm8, %v1828_v31  ;;  %v1290_v19 = vsel %vm1289_vm1, %v2247_v42, %v1286_v7  ;;  %v1525_v44 = vmul.f32 %v2249_v35, %v1524_v8  ;;  %vm1528_vm2 = vweird.f32 %v2249_v35  ;;  %v2131_v20 = vmul.f32 -1.442695, %v2835_v54 }
  0xbc   :  { %v2253_v10 = vpop.eup %2252  ;;  %v1295_v22 = vsel %vm2806_vm15, %v1294_v56, %v1290_v19  ;;  %v2850_v23 = vadd.f32 1.0, %v2251_v18  ;;  %2258 = vpow2.f32 %v2115_v17  ;;  %v2853_v24 = vadd.f32 %v2637_v40, %v458_v43  ;;  %vm1529_vm3 = vmor %vm1527_vm0, %vm1528_vm2 }
  0xbd   :  { %v1780_v25 = vmul.f32 %v1295_v22, %v2670_v1  ;;  %v1526_v12 = vadd.f32 %v2249_v35, %v1525_v44  ;;  %v2856_v26 = vadd.f32 1.0, %v2253_v10  ;;  %2260 = vpow2.f32 %v2131_v20 }
  0xbe   :  { %v2255_v29 = vpop.eup %2254  ;;  %v1534_v30 = vor.u32 1.1754944e-38, %v1533_v14  ;;  %2262 = vrcp.f32 %v2850_v23  ;;  %vm1532_vm4 = vcmp.eq.f32.partialorder %v1531_v11, 8.507059e+37  ;;  %v826_v15 = vand.u32 2147483647, %v2850_v23  ;;  %v501_v14 = vpop.f32.mrf.mxu3 }
  0xbf   :  { %v1844_v32 = vpack.c.bf16 %v1780_v25, %v1780_v25  ;;  %v1530_v33 = vsel %vm1529_vm3, %v2249_v35, %v1526_v12  ;;  %2264 = vrcp.f32 %v2856_v26  ;;  %v2147_v38 = vmul.f32 -1.442695, %v2853_v24 }
  0xc0   :  { %v2257_v37 = vpop.eup %2256  ;;  %v1535_v1 = vsel %vm1532_vm4, %v1534_v30, %v1530_v33  ;;  %v2865_v39 = vadd.f32 %v2637_v40, %v498_v27  ;;  %v828_v41 = vand.u32 2147483648, %v2850_v23  ;;  %v2873_v42 = vadd.f32 1.0, %v2255_v29 }
  0xc1   :  { %1909 = vst.msk [vmem:[%s4119_s3 + $0x84] sm:$0xf] %vm1875_vm8, %v1844_v32  ;;  %v1796_v21 = vmul.f32 %v1535_v1, %v2677_v9  ;;  %v2875_v49 = vadd.f32 1.0, %v2257_v37  ;;  %v1066_v46 = vand.u32 2147483647, %v2856_v26  ;;  %v1068_v50 = vand.u32 2147483648, %v2856_v26 }
  0xc2   :  { %v2259_v45 = vpop.eup %2258  ;;  %v2880_v47 = vadd.f32 %v2637_v40, %v381_v36  ;;  %2266 = vrcp.f32 %v2873_v42  ;;  %vm822_vm5 = vweird.f32 %v2850_v23  ;;  %vm1062_vm6 = vweird.f32 %v2856_v26 }
  0xc3   :  { %v2261_v48 = vpop.eup %2260  ;;  %v1860_v51 = vpack.c.bf16 %v1796_v21, %v1796_v21  ;;  %2268 = vrcp.f32 %v2875_v49  ;;  %v2163_v9 = vmul.f32 -1.442695, %v2865_v39  ;;  %vm2892_vm7 = vcmp.eq.f32.partialorder %v826_v15, 8.507059e+37 }
  0xc4   :  { %v2263_v34 = vpop.eup %2262  ;;  %v829_v57 = vor.u32 1.1754944e-38, %v828_v41  ;;  %2270 = vpow2.f32 %v2147_v38  ;;  %vm2897_vm9 = vcmp.eq.f32.partialorder %v1066_v46, 8.507059e+37  ;;  %v1069_v60 = vor.u32 1.1754944e-38, %v1068_v50 }
  0xc5   :  { %v2265_v52 = vpop.eup %2264  ;;  %1925 = vst.msk [vmem:[%s4119_s3 + $0xc4] sm:$0xf] %vm1875_vm8, %v1860_v51  ;;  %v818_v55 = vmul.f32 %v2263_v34, %v2850_v23  ;;  %v1306_v35 = vand.u32 2147483647, %v2873_v42  ;;  %v2903_v62 = vmul.f32 -1.442695, %v2880_v47  ;;  %vm1302_vm10 = vweird.f32 %v2873_v42  ;;  %v421_v51 = vpop.f32.mrf.mxu1 }
  0xc6   :  { %v1058_v58 = vmul.f32 %v2265_v52, %v2856_v26  ;;  %v1308_v0 = vand.u32 2147483648, %v2873_v42  ;;  %v1546_v3 = vand.u32 2147483647, %v2875_v49  ;;  %v2907_v53 = vadd.f32 1.0, %v2259_v45 }
  0xc7   :  { %v819_v63 = vsub.f32 1.0, %v818_v55  ;;  %v1548_v5 = vand.u32 2147483648, %v2875_v49  ;;  %v2911_v28 = vadd.f32 1.0, %v2261_v48  ;;  %2272 = vpow2.f32 %v2163_v9 }
  0xc8   :  { %v1059_v4 = vsub.f32 1.0, %v1058_v58  ;;  %v2267_v31 = vpop.eup %2266  ;;  %vm823_vm11 = vweird.f32 %v2263_v34  ;;  %vm1542_vm12 = vweird.f32 %v2875_v49  ;;  %2274 = vrcp.f32 %v2907_v53 }
  0xc9   :  { %v820_v7 = vmul.f32 %v2263_v34, %v819_v63  ;;  %v2269_v8 = vpop.eup %2268  ;;  %vm1063_vm13 = vweird.f32 %v2265_v52  ;;  %v1298_v11 = vmul.f32 %v2267_v31, %v2873_v42  ;;  %vm2916_vm14 = vcmp.eq.f32.partialorder %v1306_v35, 8.507059e+37  ;;  %vm824_vm0 = vmor %vm822_vm5, %vm823_vm11 }
  0xca   :  { %v1060_v43 = vmul.f32 %v2265_v52, %v1059_v4  ;;  %v2271_v17 = vpop.eup %2270  ;;  %v1309_v19 = vor.u32 1.1754944e-38, %v1308_v0  ;;  %v1538_v44 = vmul.f32 %v2269_v8, %v2875_v49  ;;  %vm2921_vm15 = vcmp.eq.f32.partialorder %v1546_v3, 8.507059e+37  ;;  %vm1064_vm1 = vmor %vm1062_vm6, %vm1063_vm13 }
  0xcb   :  { %v821_v18 = vadd.f32 %v2263_v34, %v820_v7  ;;  %v1299_v22 = vsub.f32 1.0, %v1298_v11  ;;  %v1549_v25 = vor.u32 1.1754944e-38, %v1548_v5  ;;  %2276 = vrcp.f32 %v2911_v28 }
  0xcc   :  { %v1061_v10 = vadd.f32 %v2265_v52, %v1060_v43  ;;  %vm1303_vm2 = vweird.f32 %v2267_v31  ;;  %v1539_v27 = vsub.f32 1.0, %v1538_v44  ;;  %v841_v29 = vand.u32 2147483647, %v2907_v53 }
  0xcd   :  { %v825_v12 = vsel %vm824_vm0, %v2263_v34, %v821_v18  ;;  %v2273_v30 = vpop.eup %2272  ;;  %v1300_v23 = vmul.f32 %v2267_v31, %v1299_v22  ;;  %v843_v36 = vand.u32 2147483648, %v2907_v53  ;;  %vm1543_vm3 = vweird.f32 %v2269_v8  ;;  %vm1304_vm4 = vmor %vm1302_vm10, %vm1303_vm2  ;;  %v383_v22 = vpop.f32.mrf.mxu0 }
  0xce   :  { %v830_v32 = vsel %vm2892_vm7, %v829_v57, %v825_v12  ;;  %v1065_v33 = vsel %vm1064_vm1, %v2265_v52, %v1061_v10  ;;  %v2275_v37 = vpop.eup %2274  ;;  %v1540_v26 = vmul.f32 %v2269_v8, %v1539_v27  ;;  %v1081_v45 = vand.u32 2147483647, %v2911_v28  ;;  %vm1544_vm5 = vmor %vm1542_vm12, %vm1543_vm3 }
  0xcf   :  { %v1749_v1 = vmul.f32 %v830_v32, %v2683_v13  ;;  %v1070_v15 = vsel %vm2897_vm9, %v1069_v60, %v1065_v33  ;;  %v1301_v21 = vadd.f32 %v2267_v31, %v1300_v23  ;;  %v833_v41 = vmul.f32 %v2275_v37, %v2907_v53  ;;  %v461_v60 = vpop.f32.mrf.mxu2 }
  0xd0   :  { %v1765_v38 = vmul.f32 %v1070_v15, %v2690_v16  ;;  %v1541_v50 = vadd.f32 %v2269_v8, %v1540_v26  ;;  %v1083_v13 = vand.u32 2147483648, %v2911_v28  ;;  %v2944_v48 = vadd.f32 1.0, %v2271_v17 }
  0xd1   :  { %v1813_v46 = vpack.c.bf16 %v1749_v1, %v1749_v1  ;;  %v2277_v34 = vpop.eup %2276  ;;  %v1305_v52 = vsel %vm1304_vm4, %v2267_v31, %v1301_v21  ;;  %v834_v16 = vsub.f32 1.0, %v833_v41  ;;  %v2948_v55 = vadd.f32 1.0, %v2273_v30 }
  0xd2   :  { %v1829_v9 = vpack.c.bf16 %v1765_v38, %v1765_v38  ;;  %v1310_v42 = vsel %vm2916_vm14, %v1309_v19, %v1305_v52  ;;  %v1545_v56 = vsel %vm1544_vm5, %v2269_v8, %v1541_v50  ;;  %vm838_vm6 = vweird.f32 %v2275_v37 }
  0xd3   :  { %1878 = vst.msk [vmem:[%s4119_s3 + $0x8] sm:$0xf] %vm1875_vm8, %v1813_v46  ;;  %v1073_v57 = vmul.f32 %v2277_v34, %v2911_v28  ;;  %v1781_v49 = vmul.f32 %v1310_v42, %v2746_v2  ;;  %v1550_v58 = vsel %vm2921_vm15, %v1549_v25, %v1545_v56  ;;  %v835_v59 = vmul.f32 %v2275_v37, %v834_v16  ;;  %v423_v25 = vpop.f32.mrf.mxu1 }
  0xd4   :  { %1894 = vst.msk [vmem:[%s4119_s3 + $0x48] sm:$0xf] %vm1875_vm8, %v1829_v9  ;;  %2278 = vrcp.f32 %v2944_v48  ;;  %v1797_v35 = vmul.f32 %v1550_v58, %v2821_v61  ;;  %vm837_vm7 = vweird.f32 %v2907_v53  ;;  %v2968_v0 = vadd.f32 %v2637_v40, %v421_v51 }
  0xd5   :  { %v1074_v63 = vsub.f32 1.0, %v1073_v57  ;;  %v1845_v3 = vpack.c.bf16 %v1781_v49, %v1781_v49  ;;  %v836_v4 = vadd.f32 %v2275_v37, %v835_v59  ;;  %vm842_vm9 = vcmp.eq.f32.partialorder %v841_v29, 8.507059e+37  ;;  %vm839_vm10 = vmor %vm837_vm7, %vm838_vm6 }
  0xd6   :  { %2280 = vrcp.f32 %v2948_v55  ;;  %v1861_v2 = vpack.c.bf16 %v1797_v35, %v1797_v35  ;;  %v844_v5 = vor.u32 1.1754944e-38, %v843_v36  ;;  %vm1078_vm11 = vweird.f32 %v2277_v34 }
  0xd7   :  { %v1075_v31 = vmul.f32 %v2277_v34, %v1074_v63  ;;  %1910 = vst.msk [vmem:[%s4119_s3 + $0x88] sm:$0xf] %vm1875_vm8, %v1845_v3  ;;  %v840_v61 = vsel %vm839_vm10, %v2275_v37, %v836_v4  ;;  %vm1077_vm12 = vweird.f32 %v2911_v28  ;;  %vm2977_vm13 = vcmp.eq.f32.partialorder %v1081_v45, 8.507059e+37 }
  0xd8   :  { %v1084_v7 = vor.u32 1.1754944e-38, %v1083_v13  ;;  %1926 = vst.msk [vmem:[%s4119_s3 + $0xc8] sm:$0xf] %vm1875_vm8, %v1861_v2  ;;  %v845_v8 = vsel %vm842_vm9, %v844_v5, %v840_v61  ;;  %vm1317_vm14 = vweird.f32 %v2944_v48  ;;  %2282 = vpow2.f32 %v2903_v62  ;;  %vm1079_vm15 = vmor %vm1077_vm12, %vm1078_vm11 }
  0xd9   :  { %v1076_v43 = vadd.f32 %v2277_v34, %v1075_v31  ;;  %v2132_v11 = vmul.f32 -1.442695, %v2968_v0  ;;  %v1750_v17 = vmul.f32 %v845_v8, %v2828_v6  ;;  %v1321_v18 = vand.u32 2147483647, %v2944_v48 }
  0xda   :  { %v2279_v28 = vpop.eup %2278  ;;  %v1323_v19 = vand.u32 2147483648, %v2944_v48  ;;  %v2993_v44 = vadd.f32 %v2637_v40, %v461_v60  ;;  %v1561_v62 = vand.u32 2147483647, %v2948_v55  ;;  %v3001_v30 = vadd.f32 %v2637_v40, %v501_v14  ;;  %v503_v60 = vpop.f32.mrf.mxu3 }
  0xdb   :  { %v1080_v20 = vsel %vm1079_vm15, %v2277_v34, %v1076_v43  ;;  %v1313_v10 = vmul.f32 %v2279_v28, %v2944_v48  ;;  %2284 = vpow2.f32 %v2132_v11  ;;  %v1814_v27 = vpack.c.bf16 %v1750_v17, %v1750_v17 }
  0xdc   :  { %v2281_v12 = vpop.eup %2280  ;;  %v1085_v6 = vsel %vm2977_vm13, %v1084_v7, %v1080_v20  ;;  %v2148_v29 = vmul.f32 -1.442695, %v2993_v44  ;;  %v1563_v36 = vand.u32 2147483648, %v2948_v55  ;;  %v2164_v37 = vmul.f32 -1.442695, %v3001_v30 }
  0xdd   :  { %v1766_v32 = vmul.f32 %v1085_v6, %v2835_v54  ;;  %v1314_v33 = vsub.f32 1.0, %v1313_v10  ;;  %v1553_v23 = vmul.f32 %v2281_v12, %v2948_v55  ;;  %1879 = vst.msk [vmem:[%s4119_s3 + $0xc] sm:$0xf] %vm1875_vm8, %v1814_v27  ;;  %v3012_v1 = vadd.f32 %v2637_v40, %v383_v22  ;;  %v463_v54 = vpop.f32.mrf.mxu2 }
  0xde   :  { %2286 = vpow2.f32 %v2148_v29  ;;  %v3015_v15 = vadd.f32 %v2637_v40, %v423_v25  ;;  %v2283_v26 = vpop.eup %2282  ;;  %vm1318_vm0 = vweird.f32 %v2279_v28  ;;  %vm1558_vm1 = vweird.f32 %v2281_v12 }
  0xdf   :  { %v1830_v38 = vpack.c.bf16 %v1766_v32, %v1766_v32  ;;  %v1315_v21 = vmul.f32 %v2279_v28, %v1314_v33  ;;  %v1554_v41 = vsub.f32 1.0, %v1553_v23  ;;  %v3017_v45 = vadd.f32 1.0, %v2283_v26  ;;  %vm1319_vm2 = vmor %vm1317_vm14, %vm1318_vm0 }
  0xe0   :  { %2288 = vpow2.f32 %v2164_v37  ;;  %v2117_v46 = vmul.f32 -1.442695, %v3012_v1  ;;  %v2133_v50 = vmul.f32 -1.442695, %v3015_v15  ;;  %v3026_v9 = vadd.f32 %v2637_v40, %v463_v54 }
  0xe1   :  { %v2285_v13 = vpop.eup %2284  ;;  %1895 = vst.msk [vmem:[%s4119_s3 + $0x4c] sm:$0xf] %vm1875_vm8, %v1830_v38  ;;  %v1316_v51 = vadd.f32 %v2279_v28, %v1315_v21  ;;  %v1555_v34 = vmul.f32 %v2281_v12, %v1554_v41  ;;  %vm1322_vm3 = vcmp.eq.f32.partialorder %v1321_v18, 8.507059e+37  ;;  %v1324_v52 = vor.u32 1.1754944e-38, %v1323_v19 }
  0xe2   :  { %vm1557_vm4 = vweird.f32 %v2948_v55  ;;  %2290 = vrcp.f32 %v3017_v45  ;;  %v3032_v56 = vadd.f32 1.0, %v2285_v13  ;;  %vm1562_vm6 = vcmp.eq.f32.partialorder %v1561_v62, 8.507059e+37  ;;  %v506_v22 = vpop.f32.mrf.mxu3 }
  0xe3   :  { %v1320_v16 = vsel %vm1319_vm2, %v2279_v28, %v1316_v51  ;;  %v1556_v42 = vadd.f32 %v2281_v12, %v1555_v34  ;;  %2292 = vpow2.f32 %v2117_v46  ;;  %vm1559_vm5 = vmor %vm1557_vm4, %vm1558_vm1  ;;  %v1564_v58 = vor.u32 1.1754944e-38, %v1563_v36 }
  0xe4   :  { %v2287_v57 = vpop.eup %2286  ;;  %v1325_v49 = vsel %vm1322_vm3, %v1324_v52, %v1320_v16  ;;  %2294 = vpow2.f32 %v2133_v50  ;;  %v2149_v55 = vmul.f32 -1.442695, %v3026_v9  ;;  %v856_v3 = vand.u32 2147483647, %v3017_v45 }
  0xe5   :  { %v1782_v48 = vmul.f32 %v1325_v49, %v2853_v24  ;;  %v1560_v59 = vsel %vm1559_vm5, %v2281_v12, %v1556_v42  ;;  %2296 = vrcp.f32 %v3032_v56  ;;  %v858_v4 = vand.u32 2147483648, %v3017_v45 }
  0xe6   :  { %v2289_v35 = vpop.eup %2288  ;;  %v1565_v63 = vsel %vm1562_vm6, %v1564_v58, %v1560_v59  ;;  %v3039_v2 = vadd.f32 1.0, %v2287_v57  ;;  %v1096_v53 = vand.u32 2147483647, %v3032_v56  ;;  %v1098_v7 = vand.u32 2147483648, %v3032_v56 }
  0xe7   :  { %v1846_v5 = vpack.c.bf16 %v1782_v48, %v1782_v48  ;;  %v1798_v31 = vmul.f32 %v1565_v63, %v2865_v39  ;;  %v3042_v61 = vadd.f32 1.0, %v2289_v35  ;;  %v3048_v8 = vadd.f32 %v2637_v40, %v503_v60 }
  0xe8   :  { %v2291_v24 = vpop.eup %2290  ;;  %2298 = vrcp.f32 %v3039_v2  ;;  %vm852_vm7 = vweird.f32 %v3017_v45  ;;  %vm3056_vm9 = vcmp.eq.f32.partialorder %v856_v3, 8.507059e+37  ;;  %v859_v17 = vor.u32 1.1754944e-38, %v858_v4  ;;  %v386_v4 = vpop.f32.mrf.mxu0 }
  0xe9   :  { %v2293_v43 = vpop.eup %2292  ;;  %1911 = vst.msk [vmem:[%s4119_s3 + $0x8c] sm:$0xf] %vm1875_vm8, %v1846_v5  ;;  %v1862_v11 = vpack.c.bf16 %v1798_v31, %v1798_v31  ;;  %v848_v39 = vmul.f32 %v2291_v24, %v3017_v45  ;;  %2300 = vpow2.f32 %v2149_v55  ;;  %v1336_v40 = vand.u32 2147483647, %v3039_v2 }
  0xea   :  { %v2295_v14 = vpop.eup %2294  ;;  %2302 = vrcp.f32 %v3042_v61  ;;  %vm1092_vm10 = vweird.f32 %v3032_v56  ;;  %v1338_v20 = vand.u32 2147483648, %v3039_v2  ;;  %v3068_v10 = vadd.f32 1.0, %v2293_v43 }
  0xeb   :  { %v2297_v18 = vpop.eup %2296  ;;  %1927 = vst.msk [vmem:[%s4119_s3 + $0xcc] sm:$0xf] %vm1875_vm8, %v1862_v11  ;;  %v849_v19 = vsub.f32 1.0, %v848_v39  ;;  %vm3071_vm11 = vcmp.eq.f32.partialorder %v1096_v53, 8.507059e+37  ;;  %v1099_v25 = vor.u32 1.1754944e-38, %v1098_v7  ;;  %v1578_v12 = vand.u32 2147483648, %v3042_v61  ;;  %v466_v53 = vpop.f32.mrf.mxu2 }
  0xec   :  { %v1088_v62 = vmul.f32 %v2297_v18, %v3032_v56  ;;  %vm853_vm12 = vweird.f32 %v2291_v24  ;;  %v1576_v6 = vand.u32 2147483647, %v3042_v61  ;;  %2304 = vrcp.f32 %v3068_v10 }
  0xed   :  { %v850_v27 = vmul.f32 %v2291_v24, %v849_v19  ;;  %vm1332_vm13 = vweird.f32 %v3039_v2  ;;  %v873_v33 = vand.u32 2147483648, %v3068_v10  ;;  %v3080_v23 = vadd.f32 1.0, %v2295_v14  ;;  %vm854_vm1 = vmor %vm852_vm7, %vm853_vm12 }
  0xee   :  { %v2299_v29 = vpop.eup %2298  ;;  %v1089_v32 = vsub.f32 1.0, %v1088_v62  ;;  %vm1093_vm14 = vweird.f32 %v2297_v18  ;;  %vm3083_vm15 = vcmp.eq.f32.partialorder %v1336_v40, 8.507059e+37  ;;  %v1339_v38 = vor.u32 1.1754944e-38, %v1338_v20 }
  0xef   :  { %v2301_v36 = vpop.eup %2300  ;;  %v851_v37 = vadd.f32 %v2291_v24, %v850_v27  ;;  %v1328_v54 = vmul.f32 %v2299_v29, %v3039_v2  ;;  %vm1572_vm0 = vweird.f32 %v3042_v61  ;;  %v1579_v46 = vor.u32 1.1754944e-38, %v1578_v12  ;;  %vm1094_vm5 = vmor %vm1092_vm10, %vm1093_vm14 }
  0xf0   :  { %v2303_v21 = vpop.eup %2302  ;;  %v1090_v41 = vmul.f32 %v2297_v18, %v1089_v32  ;;  %v871_v50 = vand.u32 2147483647, %v3068_v10  ;;  %2306 = vrcp.f32 %v3080_v23  ;;  %vm1333_vm2 = vweird.f32 %v2299_v29 }
  0xf1   :  { %v855_v13 = vsel %vm854_vm1, %v2291_v24, %v851_v37  ;;  %v1329_v51 = vsub.f32 1.0, %v1328_v54  ;;  %v1568_v34 = vmul.f32 %v2303_v21, %v3042_v61  ;;  %vm3094_vm3 = vcmp.eq.f32.partialorder %v1576_v6, 8.507059e+37  ;;  %v426_v24 = vpop.f32.mrf.mxu1  ;;  %v3154_v37 = vld [vmem:[%s4117_s2] ss:$0 sm:$0xff] }
  0xf2   :  { %v860_v16 = vsel %vm3056_vm9, %v859_v17, %v855_v13  ;;  %v1091_v45 = vadd.f32 %v2297_v18, %v1090_v41  ;;  %vm867_vm4 = vweird.f32 %v3068_v10  ;;  %v874_v42 = vor.u32 1.1754944e-38, %v873_v33  ;;  %v2305_v49 = vpop.eup %2304  ;;  %vm1334_vm9 = vmor %vm1332_vm13, %vm1333_vm2 }
  0xf3   :  { %v3101_v57 = vadd.f32 1.0, %v2301_v36  ;;  %v1751_v58 = vmul.f32 %v860_v16, %v2880_v47  ;;  %v1330_v48 = vmul.f32 %v2299_v29, %v1329_v51  ;;  %v1569_v59 = vsub.f32 1.0, %v1568_v34  ;;  %v468_v52 = vpop.f32.mrf.mxu2 }
  0xf4   :  { %vm1573_vm6 = vweird.f32 %v2303_v21  ;;  %v1095_v55 = vsel %vm1094_vm5, %v2297_v18, %v1091_v45  ;;  %v863_v60 = vmul.f32 %v2305_v49, %v3068_v10  ;;  %vm3108_vm7 = vcmp.eq.f32.partialorder %v871_v50, 8.507059e+37  ;;  %v388_v50 = vpop.f32.mrf.mxu0 }
  0xf5   :  { %v1111_v63 = vand.u32 2147483647, %v3080_v23  ;;  %v1113_v3 = vand.u32 2147483648, %v3080_v23  ;;  %v1815_v47 = vpack.c.bf16 %v1751_v58, %v1751_v58  ;;  %v1100_v56 = vsel %vm3071_vm11, %v1099_v25, %v1095_v55  ;;  %vm1574_vm12 = vmor %vm1572_vm0, %vm1573_vm6 }
  0xf6   :  { %v1331_v5 = vadd.f32 %v2299_v29, %v1330_v48  ;;  %v1570_v31 = vmul.f32 %v2303_v21, %v1569_v59  ;;  %v2307_v7 = vpop.eup %2306  ;;  %v1767_v43 = vmul.f32 %v1100_v56, %v2968_v0  ;;  %v864_v11 = vsub.f32 1.0, %v863_v60 }
  0xf7   :  { %vm1107_vm10 = vweird.f32 %v3080_v23  ;;  %2308 = vrcp.f32 %v3101_v57  ;;  %1880 = vst.msk [vmem:[%s4119_s3 + $0x10] sm:$0xf] %vm1875_vm8, %v1815_v47  ;;  %vm868_vm11 = vweird.f32 %v2305_v49  ;;  %v1103_v28 = vmul.f32 %v2307_v7, %v3080_v23  ;;  %v508_v47 = vpop.f32.mrf.mxu3 }
  0xf8   :  { %v1335_v39 = vsel %vm1334_vm9, %v2299_v29, %v1331_v5  ;;  %v1571_v14 = vadd.f32 %v2303_v21, %v1570_v31  ;;  %v1831_v0 = vpack.c.bf16 %v1767_v43, %v1767_v43  ;;  %v865_v17 = vmul.f32 %v2305_v49, %v864_v11 }
  0xf9   :  { %v1340_v2 = vsel %vm3083_vm15, %v1339_v38, %v1335_v39  ;;  %vm3132_vm13 = vcmp.eq.f32.partialorder %v1111_v63, 8.507059e+37  ;;  %v1104_v20 = vsub.f32 1.0, %v1103_v28  ;;  %v1114_v62 = vor.u32 1.1754944e-38, %v1113_v3  ;;  %vm869_vm15 = vmor %vm867_vm4, %vm868_vm11  ;;  %v428_v34 = vpop.f32.mrf.mxu1 }
  0xfa   :  { %v1783_v18 = vmul.f32 %v1340_v2, %v2993_v44  ;;  %v1575_v19 = vsel %vm1574_vm12, %v2303_v21, %v1571_v14  ;;  %1896 = vst.msk [vmem:[%s4119_s3 + $0x50] sm:$0xf] %vm1875_vm8, %v1831_v0  ;;  %v866_v25 = vadd.f32 %v2305_v49, %v865_v17  ;;  %vm1108_vm14 = vweird.f32 %v2307_v7 }
  0xfb   :  { %v1580_v61 = vsel %vm3094_vm3, %v1579_v46, %v1575_v19  ;;  %v2165_v12 = vmul.f32 -1.442695, %v3048_v8  ;;  %v1105_v44 = vmul.f32 %v2307_v7, %v1104_v20  ;;  %vm1347_vm0 = vweird.f32 %v3101_v57  ;;  %vm1109_vm1 = vmor %vm1107_vm10, %vm1108_vm14 }
  0xfc   :  { %v1847_v27 = vpack.c.bf16 %v1783_v18, %v1783_v18  ;;  %v1799_v6 = vmul.f32 %v1580_v61, %v3001_v30  ;;  %v1351_v29 = vand.u32 2147483647, %v3101_v57  ;;  %v870_v33 = vsel %vm869_vm15, %v2305_v49, %v866_v25  ;;  %v391_v20 = vpop.f32.mrf.mxu0 }
  0xfd   :  { %v2309_v32 = vpop.eup %2308  ;;  %v1353_v36 = vand.u32 2147483648, %v3101_v57  ;;  %2310 = vpow2.f32 %v2165_v12  ;;  %v3157_v30 = vadd.f32 %v3154_v37, %v386_v4  ;;  %v875_v54 = vsel %vm3108_vm7, %v874_v42, %v870_v33 }
  0xfe   :  { %1912 = vst.msk [vmem:[%s4119_s3 + $0x90] sm:$0xf] %vm1875_vm8, %v1847_v27  ;;  %v1863_v10 = vpack.c.bf16 %v1799_v6, %v1799_v6  ;;  %v1106_v26 = vadd.f32 %v2307_v7, %v1105_v44  ;;  %v1343_v38 = vmul.f32 %v2309_v32, %v3101_v57  ;;  %v1752_v21 = vmul.f32 %v875_v54, %v3012_v1 }
  0xff   :  { %vm1348_vm2 = vweird.f32 %v2309_v32  ;;  %v2118_v41 = vmul.f32 -1.442695, %v3157_v30  ;;  %v3172_v46 = vadd.f32 %v3154_v37, %v426_v24  ;;  %v3179_v1 = vadd.f32 %v3154_v37, %v466_v53 }
 0x100   :  { %1928 = vst.msk [vmem:[%s4119_s3 + $0xd0] sm:$0xf] %vm1875_vm8, %v1863_v10  ;;  %v1110_v13 = vsel %vm1109_vm1, %v2307_v7, %v1106_v26  ;;  %v1344_v51 = vsub.f32 1.0, %v1343_v38  ;;  %v3182_v23 = vadd.f32 %v3154_v37, %v506_v22  ;;  %v1816_v16 = vpack.c.bf16 %v1752_v21, %v1752_v21  ;;  %vm1349_vm3 = vmor %vm1347_vm0, %vm1348_vm2 }
 0x101   :  { %v1115_v45 = vsel %vm3132_vm13, %v1114_v62, %v1110_v13  ;;  %2312 = vpow2.f32 %v2118_v41  ;;  %v2134_v42 = vmul.f32 -1.442695, %v3172_v46  ;;  %v2150_v48 = vmul.f32 -1.442695, %v3179_v1  ;;  %v431_v33 = vpop.f32.mrf.mxu1 }
 0x102   :  { %v1768_v49 = vmul.f32 %v1115_v45, %v3015_v15  ;;  %v1345_v58 = vmul.f32 %v2309_v32, %v1344_v51  ;;  %v2166_v59 = vmul.f32 -1.442695, %v3182_v23  ;;  %1881 = vst.msk [vmem:[%s4119_s3 + $0x14] sm:$0xf] %vm1875_vm8, %v1816_v16  ;;  %v3195_v60 = vadd.f32 %v3154_v37, %v388_v50 }
 0x103   :  { %v2311_v55 = vpop.eup %2310  ;;  %2314 = vpow2.f32 %v2134_v42  ;;  %v3198_v35 = vadd.f32 %v3154_v37, %v428_v34  ;;  %v3201_v15 = vadd.f32 %v3154_v37, %v468_v52  ;;  %v1354_v56 = vor.u32 1.1754944e-38, %v1353_v36 }
 0x104   :  { %v1832_v63 = vpack.c.bf16 %v1768_v49, %v1768_v49  ;;  %v1346_v3 = vadd.f32 %v2309_v32, %v1345_v58  ;;  %v3203_v4 = vadd.f32 1.0, %v2311_v55  ;;  %2316 = vpow2.f32 %v2150_v48 }
 0x105   :  { %2318 = vpow2.f32 %v2166_v59  ;;  %v2119_v5 = vmul.f32 -1.442695, %v3195_v60  ;;  %vm1352_vm4 = vcmp.eq.f32.partialorder %v1351_v29, 8.507059e+37  ;;  %v2135_v7 = vmul.f32 -1.442695, %v3198_v35 }
 0x106   :  { %1897 = vst.msk [vmem:[%s4119_s3 + $0x54] sm:$0xf] %vm1875_vm8, %v1832_v63  ;;  %v1350_v31 = vsel %vm1349_vm3, %v2309_v32, %v1346_v3  ;;  %2320 = vrcp.f32 %v3203_v4  ;;  %v3216_v57 = vadd.f32 %v3154_v37, %v508_v47  ;;  %v2151_v39 = vmul.f32 -1.442695, %v3201_v15 }
 0x107   :  { %v2313_v24 = vpop.eup %2312  ;;  %v1355_v53 = vsel %vm1352_vm4, %v1354_v56, %v1350_v31  ;;  %2322 = vpow2.f32 %v2119_v5  ;;  %v1591_v2 = vand.u32 2147483647, %v3203_v4  ;;  %v1593_v17 = vand.u32 2147483648, %v3203_v4 }
 0x108   :  { %v1784_v43 = vmul.f32 %v1355_v53, %v3026_v9  ;;  %v3219_v11 = vadd.f32 1.0, %v2313_v24  ;;  %v2167_v9 = vmul.f32 -1.442695, %v3216_v57  ;;  %vm1587_vm5 = vweird.f32 %v3203_v4 }
 0x109   :  { %v2315_v14 = vpop.eup %2314  ;;  %vm3240_vm6 = vcmp.eq.f32.partialorder %v1591_v2, 8.507059e+37  ;;  %v3247_v6 = vadd.f32 %v3154_v37, %v391_v20  ;;  %v1594_v32 = vor.u32 1.1754944e-38, %v1593_v17  ;;  %v3266_v45 = vadd.f32 %v3154_v37, %v431_v33 }
 0x10a   :  { %v2317_v28 = vpop.eup %2316  ;;  %v1848_v0 = vpack.c.bf16 %v1784_v43, %v1784_v43  ;;  %2324 = vrcp.f32 %v3219_v11  ;;  %v3225_v18 = vadd.f32 1.0, %v2315_v14  ;;  %v886_v25 = vand.u32 2147483647, %v3219_v11 }
 0x10b   :  { %v2319_v40 = vpop.eup %2318  ;;  %v3227_v19 = vadd.f32 1.0, %v2317_v28  ;;  %2326 = vpow2.f32 %v2135_v7  ;;  %v888_v27 = vand.u32 2147483648, %v3219_v11  ;;  %vm882_vm7 = vweird.f32 %v3219_v11 }
 0x10c   :  { %v2321_v62 = vpop.eup %2320  ;;  %1913 = vst.msk [vmem:[%s4119_s3 + $0x94] sm:$0xf] %vm1875_vm8, %v1848_v0  ;;  %v3234_v22 = vadd.f32 1.0, %v2319_v40  ;;  %2328 = vpow2.f32 %v2151_v39  ;;  %v1126_v10 = vand.u32 2147483647, %v3225_v18  ;;  %v1128_v54 = vand.u32 2147483648, %v3225_v18 }
 0x10d   :  { %v1583_v61 = vmul.f32 %v2321_v62, %v3203_v4  ;;  %2330 = vrcp.f32 %v3225_v18  ;;  %v2323_v44 = vpop.eup %2322  ;;  %v1368_v26 = vand.u32 2147483648, %v3227_v19  ;;  %vm1588_vm9 = vweird.f32 %v2321_v62 }
 0x10e   :  { %2332 = vrcp.f32 %v3227_v19  ;;  %vm3255_vm10 = vcmp.eq.f32.partialorder %v886_v25, 8.507059e+37  ;;  %v1366_v13 = vand.u32 2147483647, %v3227_v19  ;;  %v889_v34 = vor.u32 1.1754944e-38, %v888_v27  ;;  %vm1589_vm13 = vmor %vm1587_vm5, %vm1588_vm9 }
 0x10f   :  { %v1584_v29 = vsub.f32 1.0, %v1583_v61  ;;  %2334 = vpow2.f32 %v2167_v9  ;;  %v3260_v52 = vadd.f32 1.0, %v2323_v44  ;;  %v3263_v16 = vmul.f32 -1.442695, %v3247_v6 }
 0x110   :  { %v2325_v36 = vpop.eup %2324  ;;  %2336 = vrcp.f32 %v3234_v22  ;;  %vm1122_vm11 = vweird.f32 %v3225_v18  ;;  %vm1362_vm12 = vweird.f32 %v3227_v19  ;;  %vm3274_vm15 = vcmp.eq.f32.partialorder %v1126_v10, 8.507059e+37 }
 0x111   :  { %v2327_v38 = vpop.eup %2326  ;;  %v1585_v21 = vmul.f32 %v2321_v62, %v1584_v29  ;;  %v878_v41 = vmul.f32 %v2325_v36, %v3219_v11  ;;  %vm883_vm14 = vweird.f32 %v2325_v36  ;;  %v1129_v63 = vor.u32 1.1754944e-38, %v1128_v54 }
 0x112   :  { %v2329_v51 = vpop.eup %2328  ;;  %v1369_v3 = vor.u32 1.1754944e-38, %v1368_v26  ;;  %vm3281_vm0 = vcmp.eq.f32.partialorder %v1366_v13, 8.507059e+37  ;;  %vm1602_vm1 = vweird.f32 %v3234_v22  ;;  %v1606_v4 = vand.u32 2147483647, %v3234_v22  ;;  %vm884_vm2 = vmor %vm882_vm7, %vm883_vm14 }
 0x113   :  { %v2331_v42 = vpop.eup %2330  ;;  %v1586_v49 = vadd.f32 %v2321_v62, %v1585_v21  ;;  %v879_v58 = vsub.f32 1.0, %v878_v41  ;;  %2338 = vrcp.f32 %v3260_v52  ;;  %v3290_v39 = vadd.f32 1.0, %v2327_v38 }
 0x114   :  { %v2333_v48 = vpop.eup %2332  ;;  %v1118_v59 = vmul.f32 %v2331_v42, %v3225_v18  ;;  %vm1123_vm3 = vweird.f32 %v2331_v42  ;;  %v1608_v40 = vand.u32 2147483648, %v3234_v22  ;;  %v901_v12 = vand.u32 2147483647, %v3260_v52 }
 0x115   :  { %v3278_v47 = vpop.eup %2334  ;;  %v1590_v56 = vsel %vm1589_vm13, %v2321_v62, %v1586_v49  ;;  %v880_v5 = vmul.f32 %v2325_v36, %v879_v58  ;;  %v1358_v31 = vmul.f32 %v2333_v48, %v3227_v19  ;;  %vm1363_vm4 = vweird.f32 %v2333_v48 }
 0x116   :  { %v2337_v53 = vpop.eup %2336  ;;  %v1595_v7 = vsel %vm3240_vm6, %v1594_v32, %v1590_v56  ;;  %v1119_v43 = vsub.f32 1.0, %v1118_v59  ;;  %vm1124_vm6 = vmor %vm1122_vm11, %vm1123_vm3  ;;  %2340 = vrcp.f32 %v3290_v39  ;;  %vm3312_vm9 = vcmp.eq.f32.partialorder %v1606_v4, 8.507059e+37  ;;  %v471_v56 = vpop.f32.mrf.mxu2 }
 0x117   :  { %v1800_v14 = vmul.f32 %v1595_v7, %v3048_v8  ;;  %v881_v28 = vadd.f32 %v2325_v36, %v880_v5  ;;  %v1359_v0 = vsub.f32 1.0, %v1358_v31  ;;  %v1598_v2 = vmul.f32 %v2337_v53, %v3234_v22  ;;  %vm1364_vm7 = vmor %vm1362_vm12, %vm1363_vm4 }
 0x118   :  { %v1120_v17 = vmul.f32 %v2331_v42, %v1119_v43  ;;  %vm1603_vm5 = vweird.f32 %v2337_v53  ;;  %v3316_v10 = vadd.f32 1.0, %v2329_v51  ;;  %v903_v41 = vand.u32 2147483648, %v3260_v52 }
 0x119   :  { %v1864_v9 = vpack.c.bf16 %v1800_v14, %v1800_v14  ;;  %v885_v20 = vsel %vm884_vm2, %v2325_v36, %v881_v28  ;;  %v1360_v62 = vmul.f32 %v2333_v48, %v1359_v0  ;;  %v1599_v61 = vsub.f32 1.0, %v1598_v2  ;;  %v2339_v29 = vpop.eup %2338  ;;  %v511_v28 = vpop.f32.mrf.mxu3 }
 0x11a   :  { %v890_v8 = vsel %vm3255_vm10, %v889_v34, %v885_v20  ;;  %v1121_v25 = vadd.f32 %v2331_v42, %v1120_v17  ;;  %v1609_v36 = vor.u32 1.1754944e-38, %v1608_v40  ;;  %vm1604_vm10 = vmor %vm1602_vm1, %vm1603_vm5  ;;  %v893_v19 = vmul.f32 %v2339_v29, %v3260_v52  ;;  %v393_v0 = vpop.f32.mrf.mxu0 }
 0x11b   :  { %1929 = vst.msk [vmem:[%s4119_s3 + $0xd4] sm:$0xf] %vm1875_vm8, %v1864_v9  ;;  %v1753_v11 = vmul.f32 %v890_v8, %v3157_v30  ;;  %v1361_v27 = vadd.f32 %v2333_v48, %v1360_v62  ;;  %v1600_v44 = vmul.f32 %v2337_v53, %v1599_v61  ;;  %vm897_vm11 = vweird.f32 %v3260_v52 }
 0x11c   :  { %v1125_v32 = vsel %vm1124_vm6, %v2331_v42, %v1121_v25  ;;  %vm3334_vm12 = vcmp.eq.f32.partialorder %v901_v12, 8.507059e+37  ;;  %v894_v34 = vsub.f32 1.0, %v893_v19  ;;  %2342 = vrcp.f32 %v3316_v10  ;;  %v2341_v42 = vpop.eup %2340 }
 0x11d   :  { %v1817_v30 = vpack.c.bf16 %v1753_v11, %v1753_v11  ;;  %v1130_v18 = vsel %vm3274_vm15, %v1129_v63, %v1125_v32  ;;  %v1365_v54 = vsel %vm1364_vm7, %v2333_v48, %v1361_v27  ;;  %v1601_v26 = vadd.f32 %v2337_v53, %v1600_v44  ;;  %v433_v44 = vpop.f32.mrf.mxu1 }
 0x11e   :  { %v1769_v38 = vmul.f32 %v1130_v18, %v3172_v46  ;;  %v1370_v21 = vsel %vm3281_vm0, %v1369_v3, %v1365_v54  ;;  %v1143_v48 = vand.u32 2147483648, %v3290_v39  ;;  %v895_v59 = vmul.f32 %v2339_v29, %v894_v34 }
 0x11f   :  { %1882 = vst.msk [vmem:[%s4119_s3 + $0x18] sm:$0xf] %vm1875_vm8, %v1817_v30  ;;  %v1785_v50 = vmul.f32 %v1370_v21, %v3179_v1  ;;  %v1605_v13 = vsel %vm1604_vm10, %v2337_v53, %v1601_v26  ;;  %v1141_v1 = vand.u32 2147483647, %v3290_v39  ;;  %vm898_vm13 = vweird.f32 %v2339_v29 }
 0x120   :  { %v1833_v22 = vpack.c.bf16 %v1769_v38, %v1769_v38  ;;  %v1610_v51 = vsel %vm3312_vm9, %v1609_v36, %v1605_v13  ;;  %v904_v55 = vor.u32 1.1754944e-38, %v903_v41  ;;  %v1133_v63 = vmul.f32 %v2341_v42, %v3290_v39  ;;  %vm899_vm15 = vmor %vm897_vm11, %vm898_vm13 }
 0x121   :  { %v1849_v49 = vpack.c.bf16 %v1785_v50, %v1785_v50  ;;  %v1801_v58 = vmul.f32 %v1610_v51, %v3182_v23  ;;  %vm1137_vm14 = vweird.f32 %v3290_v39  ;;  %v3355_v3 = vadd.f32 1.0, %v3278_v47  ;;  %v513_v47 = vpop.f32.mrf.mxu3 }
 0x122   :  { %1898 = vst.msk [vmem:[%s4119_s3 + $0x58] sm:$0xf] %vm1875_vm8, %v1833_v22  ;;  %2344 = vpow2.f32 %v3263_v16  ;;  %v896_v5 = vadd.f32 %v2339_v29, %v895_v59  ;;  %v1134_v31 = vsub.f32 1.0, %v1133_v63  ;;  %v1381_v24 = vand.u32 2147483647, %v3316_v10  ;;  %v2343_v53 = vpop.eup %2342 }
 0x123   :  { %1914 = vst.msk [vmem:[%s4119_s3 + $0x98] sm:$0xf] %vm1875_vm8, %v1849_v49  ;;  %v1865_v23 = vpack.c.bf16 %v1801_v58, %v1801_v58  ;;  %v2136_v4 = vmul.f32 -1.442695, %v3266_v45  ;;  %vm1138_vm0 = vweird.f32 %v2341_v42  ;;  %vm3366_vm1 = vcmp.eq.f32.partialorder %v1141_v1, 8.507059e+37 }
 0x124   :  { %v1144_v16 = vor.u32 1.1754944e-38, %v1143_v48  ;;  %2346 = vrcp.f32 %v3355_v3  ;;  %v900_v7 = vsel %vm899_vm15, %v2339_v29, %v896_v5  ;;  %v1135_v43 = vmul.f32 %v2341_v42, %v1134_v31  ;;  %vm1139_vm4 = vmor %vm1137_vm14, %vm1138_vm0 }
 0x125   :  { %1930 = vst.msk [vmem:[%s4119_s3 + $0xd8] sm:$0xf] %vm1875_vm8, %v1865_v23  ;;  %2348 = vpow2.f32 %v2136_v4  ;;  %v3372_v14 = vadd.f32 %v3154_v37, %v471_v56  ;;  %v905_v52 = vsel %vm3334_vm12, %v904_v55, %v900_v7  ;;  %v1373_v2 = vmul.f32 %v2343_v53, %v3316_v10  ;;  %v473_v23 = vpop.f32.mrf.mxu2 }
 0x126   :  { %vm1377_vm2 = vweird.f32 %v3316_v10  ;;  %v1383_v17 = vand.u32 2147483648, %v3316_v10  ;;  %v1754_v40 = vmul.f32 %v905_v52, %v3195_v60  ;;  %v1136_v9 = vadd.f32 %v2341_v42, %v1135_v43 }
 0x127   :  { %vm3380_vm3 = vcmp.eq.f32.partialorder %v1381_v24, 8.507059e+37  ;;  %v2152_v62 = vmul.f32 -1.442695, %v3372_v14  ;;  %v1374_v8 = vsub.f32 1.0, %v1373_v2  ;;  %vm1378_vm5 = vweird.f32 %v2343_v53 }
 0x128   :  { %v2345_v61 = vpop.eup %2344  ;;  %v3389_v25 = vadd.f32 %v3154_v37, %v511_v28  ;;  %v3392_v12 = vadd.f32 %v3154_v37, %v393_v0  ;;  %v1818_v60 = vpack.c.bf16 %v1754_v40, %v1754_v40  ;;  %v1140_v11 = vsel %vm1139_vm4, %v2341_v42, %v1136_v9  ;;  %vm1379_vm6 = vmor %vm1377_vm2, %vm1378_vm5 }
 0x129   :  { %v3394_v27 = vadd.f32 1.0, %v2345_v61  ;;  %2350 = vpow2.f32 %v2152_v62  ;;  %v1145_v32 = vsel %vm3366_vm1, %v1144_v16, %v1140_v11  ;;  %v1375_v39 = vmul.f32 %v2343_v53, %v1374_v8 }
 0x12a   :  { %v2347_v29 = vpop.eup %2346  ;;  %v2168_v33 = vmul.f32 -1.442695, %v3389_v25  ;;  %v2121_v36 = vmul.f32 -1.442695, %v3392_v12  ;;  %1883 = vst.msk [vmem:[%s4119_s3 + $0x1c] sm:$0xf] %vm1875_vm8, %v1818_v60  ;;  %v1770_v18 = vmul.f32 %v1145_v32, %v3198_v35  ;;  %v3410_v41 = vadd.f32 %v3154_v37, %v433_v44 }
 0x12b   :  { %v2349_v30 = vpop.eup %2348  ;;  %v1384_v54 = vor.u32 1.1754944e-38, %v1383_v17  ;;  %v1613_v26 = vmul.f32 %v2347_v29, %v3355_v3  ;;  %2352 = vrcp.f32 %v3394_v27  ;;  %v1376_v38 = vadd.f32 %v2343_v53, %v1375_v39 }
 0x12c   :  { %v1621_v21 = vand.u32 2147483647, %v3355_v3  ;;  %v1623_v19 = vand.u32 2147483648, %v3355_v3  ;;  %v1834_v50 = vpack.c.bf16 %v1770_v18, %v1770_v18  ;;  %v3415_v35 = vadd.f32 1.0, %v2349_v30  ;;  %v396_v18 = vpop.f32.mrf.mxu0 }
 0x12d   :  { %v1614_v13 = vsub.f32 1.0, %v1613_v26  ;;  %2354 = vpow2.f32 %v2168_v33  ;;  %v1380_v46 = vsel %vm1379_vm6, %v2343_v53, %v1376_v38  ;;  %v916_v22 = vand.u32 2147483647, %v3394_v27 }
 0x12e   :  { %v918_v51 = vand.u32 2147483648, %v3394_v27  ;;  %2356 = vpow2.f32 %v2121_v36  ;;  %1899 = vst.msk [vmem:[%s4119_s3 + $0x5c] sm:$0xf] %vm1875_vm8, %v1834_v50  ;;  %v1385_v10 = vsel %vm3380_vm3, %v1384_v54, %v1380_v46  ;;  %vm1618_vm7 = vweird.f32 %v2347_v29 }
 0x12f   :  { %v2351_v34 = vpop.eup %2350  ;;  %v1615_v42 = vmul.f32 %v2347_v29, %v1614_v13  ;;  %2358 = vrcp.f32 %v3415_v35  ;;  %v1786_v49 = vmul.f32 %v1385_v10, %v3201_v15  ;;  %vm1617_vm9 = vweird.f32 %v3355_v3 }
 0x130   :  { %vm3428_vm10 = vcmp.eq.f32.partialorder %v1621_v21, 8.507059e+37  ;;  %v3432_v1 = vadd.f32 1.0, %v2351_v34  ;;  %v1624_v55 = vor.u32 1.1754944e-38, %v1623_v19  ;;  %vm912_vm11 = vweird.f32 %v3394_v27  ;;  %vm1619_vm12 = vmor %vm1617_vm9, %vm1618_vm7 }
 0x131   :  { %v2353_v48 = vpop.eup %2352  ;;  %v1616_v59 = vadd.f32 %v2347_v29, %v1615_v42  ;;  %v2137_v63 = vmul.f32 -1.442695, %v3410_v41  ;;  %v1850_v56 = vpack.c.bf16 %v1786_v49, %v1786_v49  ;;  %vm3437_vm13 = vcmp.eq.f32.partialorder %v916_v22, 8.507059e+37 }
 0x132   :  { %v908_v15 = vmul.f32 %v2353_v48, %v3394_v27  ;;  %v919_v5 = vor.u32 1.1754944e-38, %v918_v51  ;;  %vm1152_vm14 = vweird.f32 %v3415_v35  ;;  %v1156_v4 = vand.u32 2147483647, %v3415_v35 }
 0x133   :  { %v2355_v31 = vpop.eup %2354  ;;  %v1620_v24 = vsel %vm1619_vm12, %v2347_v29, %v1616_v59  ;;  %2360 = vrcp.f32 %v3432_v1  ;;  %1915 = vst.msk [vmem:[%s4119_s3 + $0x9c] sm:$0xf] %vm1875_vm8, %v1850_v56  ;;  %v1158_v43 = vand.u32 2147483648, %v3415_v35  ;;  %v3452_v28 = vadd.f32 %v3154_v37, %v473_v23 }
 0x134   :  { %v2357_v16 = vpop.eup %2356  ;;  %v1625_v53 = vsel %vm3428_vm10, %v1624_v55, %v1620_v24  ;;  %v909_v7 = vsub.f32 1.0, %v908_v15  ;;  %v3455_v2 = vadd.f32 1.0, %v2355_v31  ;;  %2362 = vpow2.f32 %v2137_v63  ;;  %v436_v24 = vpop.f32.mrf.mxu1 }
 0x135   :  { %v2359_v0 = vpop.eup %2358  ;;  %v1802_v52 = vmul.f32 %v1625_v53, %v3216_v57  ;;  %v3457_v17 = vadd.f32 1.0, %v2357_v16  ;;  %vm913_vm15 = vweird.f32 %v2353_v48  ;;  %v3461_v20 = vadd.f32 %v3154_v37, %v513_v47  ;;  %v476_v53 = vpop.f32.mrf.mxu2 }
 0x136   :  { %v910_v40 = vmul.f32 %v2353_v48, %v909_v7  ;;  %v1148_v9 = vmul.f32 %v2359_v0, %v3415_v35  ;;  %v1396_v61 = vand.u32 2147483647, %v3432_v1  ;;  %v1398_v8 = vand.u32 2147483648, %v3432_v1  ;;  %vm914_vm1 = vmor %vm912_vm11, %vm913_vm15  ;;  %v516_v7 = vpop.f32.mrf.mxu3 }
 0x137   :  { %v1866_v62 = vpack.c.bf16 %v1802_v52, %v1802_v52  ;;  %2364 = vrcp.f32 %v3455_v2  ;;  %vm3466_vm0 = vcmp.eq.f32.partialorder %v1156_v4, 8.507059e+37  ;;  %v1159_v44 = vor.u32 1.1754944e-38, %v1158_v43 }
 0x138   :  { %v911_v57 = vadd.f32 %v2353_v48, %v910_v40  ;;  %v1149_v60 = vsub.f32 1.0, %v1148_v9  ;;  %vm1153_vm2 = vweird.f32 %v2359_v0  ;;  %vm1392_vm3 = vweird.f32 %v3432_v1 }
 0x139   :  { %v2361_v29 = vpop.eup %2360  ;;  %1931 = vst.msk [vmem:[%s4119_s3 + $0xdc] sm:$0xf] %vm1875_vm8, %v1866_v62  ;;  %v1638_v32 = vand.u32 2147483648, %v3455_v2  ;;  %2366 = vrcp.f32 %v3457_v17  ;;  %v1636_v30 = vand.u32 2147483647, %v3455_v2  ;;  %vm3483_vm4 = vcmp.eq.f32.partialorder %v1396_v61, 8.507059e+37  ;;  %vm1154_vm6 = vmor %vm1152_vm14, %vm1153_vm2  ;;  %v398_v62 = vpop.f32.mrf.mxu0 }
 0x13a   :  { %v915_v39 = vsel %vm914_vm1, %v2353_v48, %v911_v57  ;;  %v1150_v33 = vmul.f32 %v2359_v0, %v1149_v60  ;;  %v1388_v36 = vmul.f32 %v2361_v29, %v3432_v1  ;;  %v2363_v54 = vpop.eup %2362  ;;  %v1399_v38 = vor.u32 1.1754944e-38, %v1398_v8 }
 0x13b   :  { %v920_v26 = vsel %vm3437_vm13, %v919_v5, %v915_v39  ;;  %v931_v21 = vand.u32 2147483647, %v3457_v17  ;;  %vm1632_vm5 = vweird.f32 %v3455_v2  ;;  %v933_v46 = vand.u32 2147483648, %v3457_v17 }
 0x13c   :  { %v1755_v19 = vmul.f32 %v920_v26, %v3247_v6  ;;  %v1151_v50 = vadd.f32 %v2359_v0, %v1150_v33  ;;  %v1389_v13 = vsub.f32 1.0, %v1388_v36  ;;  %vm1393_vm7 = vweird.f32 %v2361_v29 }
 0x13d   :  { %v2365_v22 = vpop.eup %2364  ;;  %v1639_v51 = vor.u32 1.1754944e-38, %v1638_v32  ;;  %v3494_v34 = vadd.f32 1.0, %v2363_v54  ;;  %v2153_v10 = vmul.f32 -1.442695, %v3452_v28  ;;  %vm3498_vm9 = vcmp.eq.f32.partialorder %v1636_v30, 8.507059e+37  ;;  %vm1394_vm11 = vmor %vm1392_vm3, %vm1393_vm7 }
 0x13e   :  { %v1819_v42 = vpack.c.bf16 %v1755_v19, %v1755_v19  ;;  %v1155_v49 = vsel %vm1154_vm6, %v2359_v0, %v1151_v50  ;;  %v1390_v6 = vmul.f32 %v2361_v29, %v1389_v13  ;;  %v1628_v58 = vmul.f32 %v2365_v22, %v3455_v2 }
 0x13f   :  { %vm927_vm10 = vweird.f32 %v3457_v17  ;;  %v2367_v59 = vpop.eup %2366  ;;  %v1160_v35 = vsel %vm3466_vm0, %v1159_v44, %v1155_v49  ;;  %2368 = vrcp.f32 %v3494_v34  ;;  %v2169_v55 = vmul.f32 -1.442695, %v3461_v20 }
 0x140   :  { %v3508_v63 = vadd.f32 %v3154_v37, %v396_v18  ;;  %1884 = vst.msk [vmem:[%s4119_s3 + $0x20] sm:$0xf] %vm1875_vm8, %v1819_v42  ;;  %v1771_v23 = vmul.f32 %v1160_v35, %v3266_v45  ;;  %v1391_v56 = vadd.f32 %v2361_v29, %v1390_v6  ;;  %v1629_v15 = vsub.f32 1.0, %v1628_v58 }
 0x141   :  { %v923_v3 = vmul.f32 %v2367_v59, %v3457_v17  ;;  %vm1633_vm12 = vweird.f32 %v2365_v22  ;;  %vm3519_vm13 = vcmp.eq.f32.partialorder %v931_v21, 8.507059e+37  ;;  %v934_v31 = vor.u32 1.1754944e-38, %v933_v46 }
 0x142   :  { %2370 = vpow2.f32 %v2153_v10  ;;  %v1835_v4 = vpack.c.bf16 %v1771_v23, %v1771_v23  ;;  %v1395_v47 = vsel %vm1394_vm11, %v2361_v29, %v1391_v56  ;;  %v1630_v16 = vmul.f32 %v2365_v22, %v1629_v15  ;;  %vm1634_vm15 = vmor %vm1632_vm5, %vm1633_vm12 }
 0x143   :  { %v924_v45 = vsub.f32 1.0, %v923_v3  ;;  %v1400_v43 = vsel %vm3483_vm4, %v1399_v38, %v1395_v47  ;;  %vm928_vm14 = vweird.f32 %v2367_v59  ;;  %v1171_v1 = vand.u32 2147483647, %v3494_v34 }
 0x144   :  { %2372 = vpow2.f32 %v2169_v55  ;;  %1900 = vst.msk [vmem:[%s4119_s3 + $0x60] sm:$0xf] %vm1875_vm8, %v1835_v4  ;;  %v1787_v0 = vmul.f32 %v1400_v43, %v3372_v14  ;;  %v1631_v52 = vadd.f32 %v2365_v22, %v1630_v16  ;;  %v2122_v9 = vmul.f32 -1.442695, %v3508_v63  ;;  %vm929_vm0 = vmor %vm927_vm10, %vm928_vm14 }
 0x145   :  { %v925_v40 = vmul.f32 %v2367_v59, %v924_v45  ;;  %v2369_v61 = vpop.eup %2368  ;;  %v1173_v8 = vand.u32 2147483648, %v3494_v34  ;;  %v3537_v57 = vadd.f32 %v3154_v37, %v436_v24  ;;  %v3540_v60 = vadd.f32 %v3154_v37, %v476_v53 }
 0x146   :  { %v3543_v14 = vadd.f32 %v3154_v37, %v516_v7  ;;  %v1851_v11 = vpack.c.bf16 %v1787_v0, %v1787_v0  ;;  %v1635_v44 = vsel %vm1634_vm15, %v2365_v22, %v1631_v52  ;;  %v1163_v32 = vmul.f32 %v2369_v61, %v3494_v34 }
 0x147   :  { %v926_v29 = vadd.f32 %v2367_v59, %v925_v40  ;;  %v1640_v2 = vsel %vm3498_vm9, %v1639_v51, %v1635_v44  ;;  %2374 = vpow2.f32 %v2122_v9  ;;  %v2138_v33 = vmul.f32 -1.442695, %v3537_v57 }
 0x148   :  { %v2371_v39 = vpop.eup %2370  ;;  %v3553_v36 = vadd.f32 %v3154_v37, %v398_v62  ;;  %1916 = vst.msk [vmem:[%s4119_s3 + $0xa0] sm:$0xf] %vm1875_vm8, %v1851_v11  ;;  %v1803_v30 = vmul.f32 %v1640_v2, %v3389_v25  ;;  %v1164_v54 = vsub.f32 1.0, %v1163_v32  ;;  %vm1168_vm1 = vweird.f32 %v2369_v61 }
 0x149   :  { %v930_v18 = vsel %vm929_vm0, %v2367_v59, %v926_v29  ;;  %v3560_v26 = vadd.f32 1.0, %v2371_v39  ;;  %2376 = vpow2.f32 %v2138_v33  ;;  %v2154_v38 = vmul.f32 -1.442695, %v3540_v60  ;;  %v438_v59 = vpop.f32.mrf.mxu1 }
 0x14a   :  { %v2373_v27 = vpop.eup %2372  ;;  %v935_v17 = vsel %vm3519_vm13, %v934_v31, %v930_v18  ;;  %v1867_v21 = vpack.c.bf16 %v1803_v30, %v1803_v30  ;;  %v1165_v50 = vmul.f32 %v2369_v61, %v1164_v54  ;;  %v2170_v25 = vmul.f32 -1.442695, %v3543_v14  ;;  %v478_v31 = vpop.f32.mrf.mxu2 }
 0x14b   :  { %v1756_v19 = vmul.f32 %v935_v17, %v3392_v12  ;;  %2378 = vrcp.f32 %v3560_v26  ;;  %v3567_v13 = vadd.f32 1.0, %v2373_v27  ;;  %vm1167_vm2 = vweird.f32 %v3494_v34 }
 0x14c   :  { %1932 = vst.msk [vmem:[%s4119_s3 + $0xe0] sm:$0xf] %vm1875_vm8, %v1867_v21  ;;  %v1166_v22 = vadd.f32 %v2369_v61, %v1165_v50  ;;  %2380 = vpow2.f32 %v2154_v38  ;;  %vm1169_vm3 = vmor %vm1167_vm2, %vm1168_vm1  ;;  %v1174_v12 = vor.u32 1.1754944e-38, %v1173_v8  ;;  %v1411_v10 = vand.u32 2147483647, %v3560_v26 }
 0x14d   :  { %v1820_v46 = vpack.c.bf16 %v1756_v19, %v1756_v19  ;;  %v2375_v51 = vpop.eup %2374  ;;  %v1413_v42 = vand.u32 2147483648, %v3560_v26  ;;  %2382 = vrcp.f32 %v3567_v13  ;;  %vm1172_vm4 = vcmp.eq.f32.partialorder %v1171_v1, 8.507059e+37 }
 0x14e   :  { %v1170_v49 = vsel %vm1169_vm3, %v2369_v61, %v1166_v22  ;;  %v3583_v6 = vadd.f32 1.0, %v2375_v51  ;;  %v2123_v34 = vmul.f32 -1.442695, %v3553_v36  ;;  %2384 = vpow2.f32 %v2170_v25 }
 0x14f   :  { %1885 = vst.msk [vmem:[%s4119_s3 + $0x24] sm:$0xf] %vm1875_vm8, %v1820_v46  ;;  %v2377_v58 = vpop.eup %2376  ;;  %v1175_v48 = vsel %vm1172_vm4, %v1174_v12, %v1170_v49  ;;  %vm1407_vm5 = vweird.f32 %v3560_v26  ;;  %v1651_v23 = vand.u32 2147483647, %v3567_v13  ;;  %vm3591_vm6 = vcmp.eq.f32.partialorder %v1411_v10, 8.507059e+37 }
 0x150   :  { %v1772_v55 = vmul.f32 %v1175_v48, %v3410_v41  ;;  %2386 = vrcp.f32 %v3583_v6  ;;  %v1414_v3 = vor.u32 1.1754944e-38, %v1413_v42  ;;  %v1653_v5 = vand.u32 2147483648, %v3567_v13 }
 0x151   :  { %v2379_v35 = vpop.eup %2378  ;;  %vm1647_vm7 = vweird.f32 %v3567_v13  ;;  %v3597_v41 = vadd.f32 1.0, %v2377_v58  ;;  %2388 = vpow2.f32 %v2123_v34  ;;  %v3600_v47 = vadd.f32 %v3154_v37, %v438_v59 }
 0x152   :  { %v1403_v56 = vmul.f32 %v2379_v35, %v3560_v26  ;;  %v2381_v24 = vpop.eup %2380  ;;  %v1836_v4 = vpack.c.bf16 %v1772_v55, %v1772_v55  ;;  %v946_v53 = vand.u32 2147483647, %v3583_v6  ;;  %v948_v7 = vand.u32 2147483648, %v3583_v6  ;;  %v518_v55 = vpop.f32.mrf.mxu3 }
 0x153   :  { %v2383_v16 = vpop.eup %2382  ;;  %v3604_v43 = vadd.f32 1.0, %v2381_v24  ;;  %vm3611_vm9 = vcmp.eq.f32.partialorder %v1651_v23, 8.507059e+37  ;;  %2390 = vrcp.f32 %v3597_v41  ;;  %v3617_v52 = vadd.f32 %v3154_v37, %v478_v31 }
 0x154   :  { %v1404_v45 = vsub.f32 1.0, %v1403_v56  ;;  %1901 = vst.msk [vmem:[%s4119_s3 + $0x64] sm:$0xf] %vm1875_vm8, %v1836_v4  ;;  %v1643_v1 = vmul.f32 %v2383_v16, %v3567_v13  ;;  %v2385_v40 = vpop.eup %2384  ;;  %vm1408_vm10 = vweird.f32 %v2379_v35  ;;  %v1654_v62 = vor.u32 1.1754944e-38, %v1653_v5 }
 0x155   :  { %vm942_vm11 = vweird.f32 %v3583_v6  ;;  %vm1648_vm12 = vweird.f32 %v2383_v16  ;;  %2392 = vrcp.f32 %v3604_v43  ;;  %v2139_v11 = vmul.f32 -1.442695, %v3600_v47  ;;  %vm1409_vm15 = vmor %vm1407_vm5, %vm1408_vm10 }
 0x156   :  { %v1405_v9 = vmul.f32 %v2379_v35, %v1404_v45  ;;  %v2387_v61 = vpop.eup %2386  ;;  %v1644_v8 = vsub.f32 1.0, %v1643_v1  ;;  %vm3623_vm13 = vcmp.eq.f32.partialorder %v946_v53, 8.507059e+37  ;;  %v949_v37 = vor.u32 1.1754944e-38, %v948_v7  ;;  %vm1649_vm1 = vmor %vm1647_vm7, %vm1648_vm12 }
 0x157   :  { %v938_v29 = vmul.f32 %v2387_v61, %v3583_v6  ;;  %vm1182_vm14 = vweird.f32 %v3597_v41  ;;  %v2389_v39 = vpop.eup %2388  ;;  %v1186_v33 = vand.u32 2147483647, %v3597_v41  ;;  %v1188_v30 = vand.u32 2147483648, %v3597_v41 }
 0x158   :  { %v1406_v44 = vadd.f32 %v2379_v35, %v1405_v9  ;;  %v1645_v2 = vmul.f32 %v2383_v16, %v1644_v8  ;;  %v1426_v18 = vand.u32 2147483647, %v3604_v43  ;;  %vm943_vm0 = vweird.f32 %v2387_v61 }
 0x159   :  { %v939_v27 = vsub.f32 1.0, %v938_v29  ;;  %v3633_v17 = vadd.f32 1.0, %v2385_v40  ;;  %v2391_v38 = vpop.eup %2390  ;;  %v1428_v26 = vand.u32 2147483648, %v3604_v43  ;;  %2394 = vpow2.f32 %v2139_v11  ;;  %vm944_vm4 = vmor %vm942_vm11, %vm943_vm0 }
 0x15a   :  { %v1410_v54 = vsel %vm1409_vm15, %v2379_v35, %v1406_v44  ;;  %v1646_v19 = vadd.f32 %v2383_v16, %v1645_v2  ;;  %v1178_v46 = vmul.f32 %v2391_v38, %v3597_v41  ;;  %v3643_v22 = vadd.f32 1.0, %v2389_v39 }
 0x15b   :  { %v1415_v21 = vsel %vm3591_vm6, %v1414_v3, %v1410_v54  ;;  %v940_v25 = vmul.f32 %v2387_v61, %v939_v27  ;;  %v2393_v51 = vpop.eup %2392  ;;  %vm3645_vm2 = vcmp.eq.f32.partialorder %v1186_v33, 8.507059e+37  ;;  %v1189_v42 = vor.u32 1.1754944e-38, %v1188_v30  ;;  %v481_v54 = vpop.f32.mrf.mxu2 }
 0x15c   :  { %v1788_v50 = vmul.f32 %v1415_v21, %v3452_v28  ;;  %v1650_v12 = vsel %vm1649_vm1, %v2383_v16, %v1646_v19  ;;  %vm1422_vm3 = vweird.f32 %v3604_v43  ;;  %2396 = vrcp.f32 %v3633_v17  ;;  %v521_v19 = vpop.f32.mrf.mxu3 }
 0x15d   :  { %v1655_v13 = vsel %vm3611_vm9, %v1654_v62, %v1650_v12  ;;  %v941_v49 = vadd.f32 %v2387_v61, %v940_v25  ;;  %v1179_v34 = vsub.f32 1.0, %v1178_v46  ;;  %vm1183_vm5 = vweird.f32 %v2391_v38  ;;  %v401_v62 = vpop.f32.mrf.mxu0  ;;  %v3719_v25 = vld [vmem:[%s4117_s2] ss:$0 sm:$0xff] }
 0x15e   :  { %v1852_v28 = vpack.c.bf16 %v1788_v50, %v1788_v50  ;;  %v1804_v58 = vmul.f32 %v1655_v13, %v3461_v20  ;;  %v1418_v48 = vmul.f32 %v2393_v51, %v3604_v43  ;;  %vm3658_vm6 = vcmp.eq.f32.partialorder %v1426_v18, 8.507059e+37  ;;  %vm1184_vm10 = vmor %vm1182_vm14, %vm1183_vm5  ;;  %v441_v43 = vpop.f32.mrf.mxu1 }
 0x15f   :  { %v1429_v35 = vor.u32 1.1754944e-38, %v1428_v26  ;;  %v945_v23 = vsel %vm944_vm4, %v2387_v61, %v941_v49  ;;  %v1180_v20 = vmul.f32 %v2391_v38, %v1179_v34  ;;  %v1666_v56 = vand.u32 2147483647, %v3633_v17  ;;  %v2395_v6 = vpop.eup %2394 }
 0x160   :  { %1917 = vst.msk [vmem:[%s4119_s3 + $0xa4] sm:$0xf] %vm1875_vm8, %v1852_v28  ;;  %2398 = vrcp.f32 %v3643_v22  ;;  %v1868_v15 = vpack.c.bf16 %v1804_v58, %v1804_v58  ;;  %v950_v3 = vsel %vm3623_vm13, %v949_v37, %v945_v23  ;;  %v1419_v5 = vsub.f32 1.0, %v1418_v48 }
 0x161   :  { %v1668_v31 = vand.u32 2147483648, %v3633_v17  ;;  %v1757_v24 = vmul.f32 %v950_v3, %v3508_v63  ;;  %v1181_v4 = vadd.f32 %v2391_v38, %v1180_v20  ;;  %vm1423_vm7 = vweird.f32 %v2393_v51 }
 0x162   :  { %vm1662_vm9 = vweird.f32 %v3633_v17  ;;  %v2397_v16 = vpop.eup %2396  ;;  %1933 = vst.msk [vmem:[%s4119_s3 + $0xe4] sm:$0xf] %vm1875_vm8, %v1868_v15  ;;  %v1420_v45 = vmul.f32 %v2393_v51, %v1419_v5  ;;  %v961_v53 = vand.u32 2147483647, %v3643_v22  ;;  %v963_v7 = vand.u32 2147483648, %v3643_v22  ;;  %vm1424_vm13 = vmor %vm1422_vm3, %vm1423_vm7 }
 0x163   :  { %v3682_v63 = vadd.f32 1.0, %v2395_v6  ;;  %v1821_v1 = vpack.c.bf16 %v1757_v24, %v1757_v24  ;;  %v1185_v0 = vsel %vm1184_vm10, %v2391_v38, %v1181_v4  ;;  %v1658_v40 = vmul.f32 %v2397_v16, %v3633_v17 }
 0x164   :  { %vm3685_vm11 = vcmp.eq.f32.partialorder %v1666_v56, 8.507059e+37  ;;  %v1190_v41 = vsel %vm3645_vm2, %v1189_v42, %v1185_v0  ;;  %v1421_v61 = vadd.f32 %v2393_v51, %v1420_v45  ;;  %v1669_v8 = vor.u32 1.1754944e-38, %v1668_v31  ;;  %v483_v0 = vpop.f32.mrf.mxu2  ;;  %v523_v2 = vpop.f32.mrf.mxu3 }
 0x165   :  { %vm957_vm12 = vweird.f32 %v3643_v22  ;;  %v2155_v11 = vmul.f32 -1.442695, %v3617_v52  ;;  %1886 = vst.msk [vmem:[%s4119_s3 + $0x28] sm:$0xf] %vm1875_vm8, %v1821_v1  ;;  %v1773_v29 = vmul.f32 %v1190_v41, %v3537_v57  ;;  %v1659_v32 = vsub.f32 1.0, %v1658_v40  ;;  %v403_v20 = vpop.f32.mrf.mxu0 }
 0x166   :  { %v2399_v44 = vpop.eup %2398  ;;  %vm1663_vm14 = vweird.f32 %v2397_v16  ;;  %2400 = vrcp.f32 %v3682_v63  ;;  %v1425_v37 = vsel %vm1424_vm13, %v2393_v51, %v1421_v61  ;;  %vm3703_vm15 = vcmp.eq.f32.partialorder %v961_v53, 8.507059e+37  ;;  %v443_v53 = vpop.f32.mrf.mxu1 }
 0x167   :  { %v953_v39 = vmul.f32 %v2399_v44, %v3643_v22  ;;  %v964_v33 = vor.u32 1.1754944e-38, %v963_v7  ;;  %v1837_v30 = vpack.c.bf16 %v1773_v29, %v1773_v29  ;;  %v1430_v57 = vsel %vm3658_vm6, %v1429_v35, %v1425_v37  ;;  %vm1664_vm1 = vmor %vm1662_vm9, %vm1663_vm14 }
 0x168   :  { %v1660_v18 = vmul.f32 %v2397_v16, %v1659_v32  ;;  %vm958_vm0 = vweird.f32 %v2399_v44  ;;  %v1789_v27 = vmul.f32 %v1430_v57, %v3540_v60  ;;  %v1201_v21 = vand.u32 2147483647, %v3682_v63 }
 0x169   :  { %v954_v38 = vsub.f32 1.0, %v953_v39  ;;  %2402 = vpow2.f32 %v2155_v11  ;;  %1902 = vst.msk [vmem:[%s4119_s3 + $0x68] sm:$0xf] %vm1875_vm8, %v1837_v30  ;;  %v1203_v50 = vand.u32 2147483648, %v3682_v63  ;;  %v3722_v60 = vadd.f32 %v3719_v25, %v518_v55  ;;  %vm959_vm3 = vmor %vm957_vm12, %vm958_vm0 }
 0x16a   :  { %v1661_v26 = vadd.f32 %v2397_v16, %v1660_v18  ;;  %v3725_v46 = vadd.f32 %v3719_v25, %v401_v62  ;;  %v1853_v51 = vpack.c.bf16 %v1789_v27, %v1789_v27  ;;  %v3731_v10 = vadd.f32 %v3719_v25, %v441_v43 }
 0x16b   :  { %v955_v12 = vmul.f32 %v2399_v44, %v954_v38  ;;  %v3734_v42 = vadd.f32 %v3719_v25, %v481_v54  ;;  %v2171_v49 = vmul.f32 -1.442695, %v3722_v60  ;;  %v3739_v58 = vadd.f32 %v3719_v25, %v521_v19 }
 0x16c   :  { %v2401_v28 = vpop.eup %2400  ;;  %v1665_v13 = vsel %vm1664_vm1, %v2397_v16, %v1661_v26  ;;  %v2124_v34 = vmul.f32 -1.442695, %v3725_v46  ;;  %1918 = vst.msk [vmem:[%s4119_s3 + $0xa8] sm:$0xf] %vm1875_vm8, %v1853_v51  ;;  %v2140_v55 = vmul.f32 -1.442695, %v3731_v10  ;;  %v3761_v4 = vadd.f32 %v3719_v25, %v403_v20 }
 0x16d   :  { %v1670_v17 = vsel %vm3685_vm11, %v1669_v8, %v1665_v13  ;;  %v956_v48 = vadd.f32 %v2399_v44, %v955_v12  ;;  %v1193_v59 = vmul.f32 %v2401_v28, %v3682_v63  ;;  %vm1198_vm2 = vweird.f32 %v2401_v28 }
 0x16e   :  { %v1805_v35 = vmul.f32 %v1670_v17, %v3543_v14  ;;  %2404 = vpow2.f32 %v2171_v49  ;;  %v2156_v23 = vmul.f32 -1.442695, %v3734_v42  ;;  %v2172_v3 = vmul.f32 -1.442695, %v3739_v58 }
 0x16f   :  { %v2403_v56 = vpop.eup %2402  ;;  %v960_v6 = vsel %vm959_vm3, %v2399_v44, %v956_v48  ;;  %v1194_v15 = vsub.f32 1.0, %v1193_v59  ;;  %2406 = vpow2.f32 %v2124_v34  ;;  %vm1197_vm4 = vweird.f32 %v3682_v63  ;;  %v406_v48 = vpop.f32.mrf.mxu0 }
 0x170   :  { %v1869_v5 = vpack.c.bf16 %v1805_v35, %v1805_v35  ;;  %v965_v14 = vsel %vm3703_vm15, %v964_v33, %v960_v6  ;;  %v3757_v31 = vadd.f32 1.0, %v2403_v56  ;;  %2408 = vpow2.f32 %v2140_v55  ;;  %vm1199_vm5 = vmor %vm1197_vm4, %vm1198_vm2 }
 0x171   :  { %v1758_v22 = vmul.f32 %v965_v14, %v3553_v36  ;;  %v1195_v24 = vmul.f32 %v2401_v28, %v1194_v15  ;;  %2410 = vpow2.f32 %v2156_v23  ;;  %vm1202_vm6 = vcmp.eq.f32.partialorder %v1201_v21, 8.507059e+37  ;;  %v486_v15 = vpop.f32.mrf.mxu2 }
 0x172   :  { %1934 = vst.msk [vmem:[%s4119_s3 + $0xe8] sm:$0xf] %vm1875_vm8, %v1869_v5  ;;  %2412 = vrcp.f32 %v3757_v31  ;;  %v1204_v36 = vor.u32 1.1754944e-38, %v1203_v50  ;;  %v1441_v1 = vand.u32 2147483647, %v3757_v31  ;;  %v1443_v62 = vand.u32 2147483648, %v3757_v31 }
 0x173   :  { %v1822_v16 = vpack.c.bf16 %v1758_v22, %v1758_v22  ;;  %v1196_v45 = vadd.f32 %v2401_v28, %v1195_v24  ;;  %2414 = vpow2.f32 %v2172_v3  ;;  %v2125_v41 = vmul.f32 -1.442695, %v3761_v4 }
 0x174   :  { %v2405_v7 = vpop.eup %2404  ;;  %v3782_v44 = vadd.f32 %v3719_v25, %v443_v53  ;;  %v3787_v37 = vadd.f32 %v3719_v25, %v483_v0  ;;  %vm1437_vm7 = vweird.f32 %v3757_v31  ;;  %vm3792_vm9 = vcmp.eq.f32.partialorder %v1441_v1, 8.507059e+37 }
 0x175   :  { %v2407_v40 = vpop.eup %2406  ;;  %1887 = vst.msk [vmem:[%s4119_s3 + $0x2c] sm:$0xf] %vm1875_vm8, %v1822_v16  ;;  %v1200_v9 = vsel %vm1199_vm5, %v2401_v28, %v1196_v45  ;;  %v3776_v63 = vadd.f32 1.0, %v2405_v7  ;;  %v3811_v50 = vadd.f32 %v3719_v25, %v523_v2 }
 0x176   :  { %v2409_v61 = vpop.eup %2408  ;;  %v1205_v8 = vsel %vm1202_vm6, %v1204_v36, %v1200_v9  ;;  %v3779_v11 = vadd.f32 1.0, %v2407_v40  ;;  %v2141_v38 = vmul.f32 -1.442695, %v3782_v44  ;;  %v3808_v26 = vmul.f32 -1.442695, %v3787_v37 }
 0x177   :  { %v2411_v29 = vpop.eup %2410  ;;  %v1774_v32 = vmul.f32 %v1205_v8, %v3600_v47  ;;  %2416 = vrcp.f32 %v3776_v63  ;;  %v1444_v47 = vor.u32 1.1754944e-38, %v1443_v62  ;;  %v1681_v43 = vand.u32 2147483647, %v3776_v63 }
 0x178   :  { %v2413_v39 = vpop.eup %2412  ;;  %2418 = vrcp.f32 %v3779_v11  ;;  %v1683_v54 = vand.u32 2147483648, %v3776_v63  ;;  %v3798_v27 = vadd.f32 1.0, %v2409_v61  ;;  %v3805_v19 = vadd.f32 1.0, %v2411_v29 }
 0x179   :  { %v2415_v33 = vpop.eup %2414  ;;  %v1838_v30 = vpack.c.bf16 %v1774_v32, %v1774_v32  ;;  %v1433_v57 = vmul.f32 %v2413_v39, %v3757_v31  ;;  %2420 = vpow2.f32 %v2125_v41  ;;  %vm1677_vm10 = vweird.f32 %v3776_v63 }
 0x17a   :  { %v976_v51 = vand.u32 2147483647, %v3779_v11  ;;  %v978_v12 = vand.u32 2147483648, %v3779_v11  ;;  %2422 = vrcp.f32 %v3798_v27  ;;  %v3817_v28 = vadd.f32 1.0, %v2415_v33 }
 0x17b   :  { %1903 = vst.msk [vmem:[%s4119_s3 + $0x6c] sm:$0xf] %vm1875_vm8, %v1838_v30  ;;  %v1434_v21 = vsub.f32 1.0, %v1433_v57  ;;  %vm1438_vm11 = vweird.f32 %v2413_v39  ;;  %vm972_vm12 = vweird.f32 %v3779_v11  ;;  %2424 = vrcp.f32 %v3805_v19 }
 0x17c   :  { %vm3822_vm13 = vcmp.eq.f32.partialorder %v1681_v43, 8.507059e+37  ;;  %v1684_v59 = vor.u32 1.1754944e-38, %v1683_v54  ;;  %2426 = vpow2.f32 %v2141_v38  ;;  %v1216_v20 = vand.u32 2147483647, %v3798_v27  ;;  %vm1439_vm14 = vmor %vm1437_vm7, %vm1438_vm11 }
 0x17d   :  { %v2417_v13 = vpop.eup %2416  ;;  %v1435_v49 = vmul.f32 %v2413_v39, %v1434_v21  ;;  %v1218_v56 = vand.u32 2147483648, %v3798_v27  ;;  %vm3831_vm15 = vcmp.eq.f32.partialorder %v976_v51, 8.507059e+37  ;;  %v979_v3 = vor.u32 1.1754944e-38, %v978_v12 }
 0x17e   :  { %v2419_v34 = vpop.eup %2418  ;;  %v1673_v17 = vmul.f32 %v2417_v13, %v3776_v63  ;;  %2428 = vrcp.f32 %v3817_v28  ;;  %vm1678_vm0 = vweird.f32 %v2417_v13  ;;  %vm1212_vm1 = vweird.f32 %v3798_v27 }
 0x17f   :  { %v2421_v35 = vpop.eup %2420  ;;  %v1436_v55 = vadd.f32 %v2413_v39, %v1435_v49  ;;  %v968_v23 = vmul.f32 %v2419_v34, %v3779_v11  ;;  %vm973_vm2 = vweird.f32 %v2419_v34  ;;  %vm1452_vm3 = vweird.f32 %v3805_v19  ;;  %vm1679_vm5 = vmor %vm1677_vm10, %vm1678_vm0 }
 0x180   :  { %v1674_v6 = vsub.f32 1.0, %v1673_v17  ;;  %v2423_v22 = vpop.eup %2422  ;;  %v1456_v31 = vand.u32 2147483647, %v3805_v19  ;;  %vm3843_vm4 = vcmp.eq.f32.partialorder %v1216_v20, 8.507059e+37  ;;  %v1219_v0 = vor.u32 1.1754944e-38, %v1218_v56  ;;  %vm974_vm7 = vmor %vm972_vm12, %vm973_vm2 }
 0x181   :  { %v1440_v5 = vsel %vm1439_vm14, %v2413_v39, %v1436_v55  ;;  %v969_v14 = vsub.f32 1.0, %v968_v23  ;;  %v2425_v45 = vpop.eup %2424  ;;  %v1208_v36 = vmul.f32 %v2423_v22, %v3798_v27  ;;  %v1458_v41 = vand.u32 2147483648, %v3805_v19 }
 0x182   :  { %v1445_v24 = vsel %vm3792_vm9, %v1444_v47, %v1440_v5  ;;  %v1675_v16 = vmul.f32 %v2417_v13, %v1674_v6  ;;  %v2427_v40 = vpop.eup %2426  ;;  %v1448_v62 = vmul.f32 %v2425_v45, %v3805_v19  ;;  %v1696_v61 = vand.u32 2147483647, %v3817_v28  ;;  %v446_v6 = vpop.f32.mrf.mxu1 }
 0x183   :  { %v1790_v53 = vmul.f32 %v1445_v24, %v3617_v52  ;;  %v970_v7 = vmul.f32 %v2419_v34, %v969_v14  ;;  %v1209_v29 = vsub.f32 1.0, %v1208_v36  ;;  %vm1213_vm6 = vweird.f32 %v2423_v22 }
 0x184   :  { %v1676_v9 = vadd.f32 %v2417_v13, %v1675_v16  ;;  %v2429_v32 = vpop.eup %2428  ;;  %v1449_v2 = vsub.f32 1.0, %v1448_v62  ;;  %vm1453_vm9 = vweird.f32 %v2425_v45  ;;  %v3856_v33 = vadd.f32 1.0, %v2421_v35  ;;  %vm1214_vm10 = vmor %vm1212_vm1, %vm1213_vm6 }
 0x185   :  { %v1854_v8 = vpack.c.bf16 %v1790_v53, %v1790_v53  ;;  %v971_v52 = vadd.f32 %v2419_v34, %v970_v7  ;;  %v1210_v57 = vmul.f32 %v2423_v22, %v1209_v29  ;;  %v1688_v18 = vmul.f32 %v2429_v32, %v3817_v28  ;;  %vm1454_vm11 = vmor %vm1452_vm3, %vm1453_vm9 }
 0x186   :  { %v1680_v39 = vsel %vm1679_vm5, %v2417_v13, %v1676_v9  ;;  %v1450_v43 = vmul.f32 %v2425_v45, %v1449_v2  ;;  %v3868_v54 = vadd.f32 1.0, %v2427_v40  ;;  %2430 = vrcp.f32 %v3856_v33 }
 0x187   :  { %1919 = vst.msk [vmem:[%s4119_s3 + $0xac] sm:$0xf] %vm1875_vm8, %v1854_v8  ;;  %v1685_v63 = vsel %vm3822_vm13, %v1684_v59, %v1680_v39  ;;  %v975_v30 = vsel %vm974_vm7, %v2419_v34, %v971_v52  ;;  %v1211_v21 = vadd.f32 %v2423_v22, %v1210_v57  ;;  %v1689_v51 = vsub.f32 1.0, %v1688_v18 }
 0x188   :  { %v1806_v47 = vmul.f32 %v1685_v63, %v3722_v60  ;;  %v980_v11 = vsel %vm3831_vm15, %v979_v3, %v975_v30  ;;  %v1451_v13 = vadd.f32 %v2425_v45, %v1450_v43  ;;  %v1459_v49 = vor.u32 1.1754944e-38, %v1458_v41 }
 0x189   :  { %v1759_v38 = vmul.f32 %v980_v11, %v3725_v46  ;;  %v1698_v60 = vand.u32 2147483648, %v3817_v28  ;;  %v1215_v17 = vsel %vm1214_vm10, %v2423_v22, %v1211_v21  ;;  %v1690_v46 = vmul.f32 %v2429_v32, %v1689_v51 }
 0x18a   :  { %v1870_v12 = vpack.c.bf16 %v1806_v47, %v1806_v47  ;;  %vm1693_vm12 = vweird.f32 %v2429_v32  ;;  %v1220_v27 = vsel %vm3843_vm4, %v1219_v0, %v1215_v17  ;;  %v1455_v59 = vsel %vm1454_vm11, %v2425_v45, %v1451_v13  ;;  %v448_v43 = vpop.f32.mrf.mxu1 }
 0x18b   :  { %v1823_v34 = vpack.c.bf16 %v1759_v38, %v1759_v38  ;;  %vm1457_vm13 = vcmp.eq.f32.partialorder %v1456_v31, 8.507059e+37  ;;  %2432 = vrcp.f32 %v3868_v54  ;;  %v1775_v19 = vmul.f32 %v1220_v27, %v3731_v10  ;;  %v488_v38 = vpop.f32.mrf.mxu2 }
 0x18c   :  { %1935 = vst.msk [vmem:[%s4119_s3 + $0xec] sm:$0xf] %vm1875_vm8, %v1870_v12  ;;  %v1460_v35 = vsel %vm1457_vm13, %v1459_v49, %v1455_v59  ;;  %v1691_v55 = vadd.f32 %v2429_v32, %v1690_v46  ;;  %vm1692_vm14 = vweird.f32 %v3817_v28  ;;  %vm1697_vm0 = vcmp.eq.f32.partialorder %v1696_v61, 8.507059e+37  ;;  %v2431_v3 = vpop.eup %2430 }
 0x18d   :  { %1888 = vst.msk [vmem:[%s4119_s3 + $0x30] sm:$0xf] %vm1875_vm8, %v1823_v34  ;;  %v1791_v23 = vmul.f32 %v1460_v35, %v3734_v42  ;;  %vm1694_vm15 = vmor %vm1692_vm14, %vm1693_vm12  ;;  %v1699_v20 = vor.u32 1.1754944e-38, %v1698_v60  ;;  %v991_v56 = vand.u32 2147483647, %v3856_v33  ;;  %v1839_v5 = vpack.c.bf16 %v1775_v19, %v1775_v19 }
 0x18e   :  { %v1695_v14 = vsel %vm1694_vm15, %v2429_v32, %v1691_v55  ;;  %2434 = vpow2.f32 %v3808_v26  ;;  %v2173_v10 = vmul.f32 -1.442695, %v3811_v50  ;;  %v983_v28 = vmul.f32 %v2431_v3, %v3856_v33  ;;  %v408_v32 = vpop.f32.mrf.mxu0 }
 0x18f   :  { %v1855_v22 = vpack.c.bf16 %v1791_v23, %v1791_v23  ;;  %v1700_v24 = vsel %vm1697_vm0, %v1699_v20, %v1695_v14  ;;  %1904 = vst.msk [vmem:[%s4119_s3 + $0x70] sm:$0xf] %vm1875_vm8, %v1839_v5  ;;  %vm987_vm1 = vweird.f32 %v3856_v33  ;;  %v3908_v31 = vadd.f32 %v3719_v25, %v406_v48 }
 0x190   :  { %v1807_v42 = vmul.f32 %v1700_v24, %v3739_v58  ;;  %2436 = vpow2.f32 %v2173_v10  ;;  %v984_v26 = vsub.f32 1.0, %v983_v28  ;;  %v3911_v45 = vadd.f32 %v3719_v25, %v446_v6  ;;  %v526_v58 = vpop.f32.mrf.mxu3 }
 0x191   :  { %v2433_v16 = vpop.eup %2432  ;;  %1920 = vst.msk [vmem:[%s4119_s3 + $0xb0] sm:$0xf] %vm1875_vm8, %v1855_v22  ;;  %v3914_v53 = vadd.f32 %v3719_v25, %v486_v15  ;;  %vm3916_vm2 = vcmp.eq.f32.partialorder %v991_v56, 8.507059e+37  ;;  %v993_v1 = vand.u32 2147483648, %v3856_v33  ;;  %vm988_vm3 = vweird.f32 %v2431_v3 }
 0x192   :  { %v1871_v7 = vpack.c.bf16 %v1807_v42, %v1807_v42  ;;  %v1223_v0 = vmul.f32 %v2433_v16, %v3868_v54  ;;  %v985_v40 = vmul.f32 %v2431_v3, %v984_v26  ;;  %v2126_v9 = vmul.f32 -1.442695, %v3908_v31  ;;  %vm989_vm4 = vmor %vm987_vm1, %vm988_vm3 }
 0x193   :  { %v2142_v62 = vmul.f32 -1.442695, %v3911_v45  ;;  %v1231_v8 = vand.u32 2147483647, %v3868_v54  ;;  %v1233_v52 = vand.u32 2147483648, %v3868_v54  ;;  %v3931_v29 = vadd.f32 %v3719_v25, %v526_v58 }
 0x194   :  { %v2435_v41 = vpop.eup %2434  ;;  %1936 = vst.msk [vmem:[%s4119_s3 + $0xf0] sm:$0xf] %vm1875_vm8, %v1871_v7  ;;  %v1224_v61 = vsub.f32 1.0, %v1223_v0  ;;  %v986_v39 = vadd.f32 %v2431_v3, %v985_v40  ;;  %2438 = vpow2.f32 %v2126_v9  ;;  %v2158_v63 = vmul.f32 -1.442695, %v3914_v53 }
 0x195   :  { %v3933_v2 = vadd.f32 1.0, %v2435_v41  ;;  %v994_v57 = vor.u32 1.1754944e-38, %v993_v1  ;;  %vm1228_vm5 = vweird.f32 %v2433_v16  ;;  %2440 = vpow2.f32 %v2142_v62 }
 0x196   :  { %v2437_v30 = vpop.eup %2436  ;;  %v1225_v18 = vmul.f32 %v2433_v16, %v1224_v61  ;;  %v990_v47 = vsel %vm989_vm4, %v2431_v3, %v986_v39  ;;  %vm1227_vm6 = vweird.f32 %v3868_v54  ;;  %v3942_v11 = vadd.f32 %v3719_v25, %v408_v32 }
 0x197   :  { %2442 = vrcp.f32 %v3933_v2  ;;  %v995_v21 = vsel %vm3916_vm2, %v994_v57, %v990_v47  ;;  %v3946_v33 = vadd.f32 1.0, %v2437_v30  ;;  %v2174_v12 = vmul.f32 -1.442695, %v3931_v29  ;;  %vm1229_vm7 = vmor %vm1227_vm6, %vm1228_vm5 }
 0x198   :  { %v1226_v51 = vadd.f32 %v2433_v16, %v1225_v18  ;;  %v1760_v13 = vmul.f32 %v995_v21, %v3761_v4  ;;  %vm1232_vm9 = vcmp.eq.f32.partialorder %v1231_v8, 8.507059e+37  ;;  %v1234_v54 = vor.u32 1.1754944e-38, %v1233_v52  ;;  %v528_v3 = vpop.f32.mrf.mxu3 }
 0x199   :  { %2444 = vpow2.f32 %v2158_v63  ;;  %v3952_v60 = vadd.f32 %v3719_v25, %v448_v43  ;;  %v3955_v34 = vadd.f32 %v3719_v25, %v488_v38  ;;  %v1471_v27 = vand.u32 2147483647, %v3933_v2 }
 0x19a   :  { %v1230_v49 = vsel %vm1229_vm7, %v2433_v16, %v1226_v51  ;;  %2446 = vrcp.f32 %v3946_v33  ;;  %v2439_v17 = vpop.eup %2438  ;;  %v1824_v46 = vpack.c.bf16 %v1760_v13, %v1760_v13  ;;  %v2127_v4 = vmul.f32 -1.442695, %v3942_v11 }
 0x19b   :  { %v1235_v48 = vsel %vm1232_vm9, %v1234_v54, %v1230_v49  ;;  %v2441_v59 = vpop.eup %2440  ;;  %v1473_v35 = vand.u32 2147483648, %v3933_v2  ;;  %v3961_v55 = vadd.f32 1.0, %v2439_v17  ;;  %2448 = vpow2.f32 %v2174_v12 }
 0x19c   :  { %v1776_v19 = vmul.f32 %v1235_v48, %v3782_v44  ;;  %1889 = vst.msk [vmem:[%s4119_s3 + $0x34] sm:$0xf] %vm1875_vm8, %v1824_v46  ;;  %v1711_v20 = vand.u32 2147483647, %v3946_v33  ;;  %v3968_v56 = vadd.f32 1.0, %v2441_v59  ;;  %vm1467_vm10 = vweird.f32 %v3933_v2 }
 0x19d   :  { %v2443_v23 = vpop.eup %2442  ;;  %2450 = vrcp.f32 %v3961_v55  ;;  %v2143_v44 = vmul.f32 -1.442695, %v3952_v60  ;;  %vm3974_vm11 = vcmp.eq.f32.partialorder %v1471_v27, 8.507059e+37  ;;  %v1713_v10 = vand.u32 2147483648, %v3946_v33 }
 0x19e   :  { %v1840_v6 = vpack.c.bf16 %v1776_v19, %v1776_v19  ;;  %v1463_v15 = vmul.f32 %v2443_v23, %v3933_v2  ;;  %2452 = vrcp.f32 %v3968_v56  ;;  %v1474_v28 = vor.u32 1.1754944e-38, %v1473_v35 }
 0x19f   :  { %v2445_v5 = vpop.eup %2444  ;;  %vm1707_vm12 = vweird.f32 %v3946_v33  ;;  %v3986_v42 = vmul.f32 -1.442695, %v3955_v34  ;;  %vm3989_vm13 = vcmp.eq.f32.partialorder %v1711_v20, 8.507059e+37  ;;  %2454 = vpow2.f32 %v2127_v4 }
 0x1a0   :  { %v2447_v22 = vpop.eup %2446  ;;  %1905 = vst.msk [vmem:[%s4119_s3 + $0x74] sm:$0xf] %vm1875_vm8, %v1840_v6  ;;  %v1464_v24 = vsub.f32 1.0, %v1463_v15  ;;  %v3994_v58 = vadd.f32 %v3719_v25, %v528_v3  ;;  %vm1468_vm14 = vweird.f32 %v2443_v23  ;;  %v1006_v1 = vand.u32 2147483647, %v3961_v55 }
 0x1a1   :  { %v1703_v16 = vmul.f32 %v2447_v22, %v3946_v33  ;;  %v2449_v7 = vpop.eup %2448  ;;  %v3997_v0 = vadd.f32 1.0, %v2445_v5  ;;  %v1714_v9 = vor.u32 1.1754944e-38, %v1713_v10  ;;  %vm1002_vm15 = vweird.f32 %v3961_v55  ;;  %vm1469_vm1 = vmor %vm1467_vm10, %vm1468_vm14 }
 0x1a2   :  { %v1465_v36 = vmul.f32 %v2443_v23, %v1464_v24  ;;  %v1008_v62 = vand.u32 2147483648, %v3961_v55  ;;  %vm1242_vm0 = vweird.f32 %v3968_v56  ;;  %v4003_v25 = vadd.f32 1.0, %v2449_v7 }
 0x1a3   :  { %v1704_v40 = vsub.f32 1.0, %v1703_v16  ;;  %v2451_v41 = vpop.eup %2450  ;;  %2456 = vrcp.f32 %v3997_v0  ;;  %vm1708_vm2 = vweird.f32 %v2447_v22  ;;  %v1246_v39 = vand.u32 2147483647, %v3968_v56 }
 0x1a4   :  { %v1466_v61 = vadd.f32 %v2443_v23, %v1465_v36  ;;  %v2453_v8 = vpop.eup %2452  ;;  %v998_v32 = vmul.f32 %v2451_v41, %v3961_v55  ;;  %vm4009_vm3 = vcmp.eq.f32.partialorder %v1006_v1, 8.507059e+37  ;;  %v1248_v18 = vand.u32 2147483648, %v3968_v56  ;;  %vm1709_vm4 = vmor %vm1707_vm12, %vm1708_vm2 }
 0x1a5   :  { %v1705_v52 = vmul.f32 %v2447_v22, %v1704_v40  ;;  %v1238_v57 = vmul.f32 %v2453_v8, %v3968_v56  ;;  %v2455_v47 = vpop.eup %2454  ;;  %2458 = vpow2.f32 %v2143_v44  ;;  %v1009_v51 = vor.u32 1.1754944e-38, %v1008_v62 }
 0x1a6   :  { %v1470_v63 = vsel %vm1469_vm1, %v2443_v23, %v1466_v61  ;;  %v999_v38 = vsub.f32 1.0, %v998_v32  ;;  %2460 = vrcp.f32 %v4003_v25  ;;  %vm1003_vm5 = vweird.f32 %v2451_v41 }
 0x1a7   :  { %v1475_v2 = vsel %vm3974_vm11, %v1474_v28, %v1470_v63  ;;  %v1706_v43 = vadd.f32 %v2447_v22, %v1705_v52  ;;  %v1239_v12 = vsub.f32 1.0, %v1238_v57  ;;  %vm1243_vm6 = vweird.f32 %v2453_v8  ;;  %vm1004_vm9 = vmor %vm1002_vm15, %vm1003_vm5 }
 0x1a8   :  { %v1792_v21 = vmul.f32 %v1475_v2, %v3787_v37  ;;  %v1000_v54 = vmul.f32 %v2451_v41, %v999_v38  ;;  %v4023_v27 = vadd.f32 1.0, %v2455_v47  ;;  %vm4026_vm7 = vcmp.eq.f32.partialorder %v1246_v39, 8.507059e+37  ;;  %vm1244_vm10 = vmor %vm1242_vm0, %vm1243_vm6 }
 0x1a9   :  { %v1710_v13 = vsel %vm1709_vm4, %v2447_v22, %v1706_v43  ;;  %v2457_v49 = vpop.eup %2456  ;;  %v1240_v48 = vmul.f32 %v2453_v8, %v1239_v12  ;;  %v1249_v35 = vor.u32 1.1754944e-38, %v1248_v18  ;;  %v1486_v23 = vand.u32 2147483647, %v3997_v0 }
 0x1aa   :  { %v1856_v17 = vpack.c.bf16 %v1792_v21, %v1792_v21  ;;  %v1715_v46 = vsel %vm3989_vm13, %v1714_v9, %v1710_v13  ;;  %v1001_v33 = vadd.f32 %v2451_v41, %v1000_v54  ;;  %v1478_v59 = vmul.f32 %v2457_v49, %v3997_v0 }
 0x1ab   :  { %v1808_v37 = vmul.f32 %v1715_v46, %v3811_v50  ;;  %v1241_v19 = vadd.f32 %v2453_v8, %v1240_v48  ;;  %2462 = vrcp.f32 %v4023_v27  ;;  %v2459_v50 = vpop.eup %2458  ;;  %v2175_v44 = vmul.f32 -1.442695, %v3994_v58 }
 0x1ac   :  { %1921 = vst.msk [vmem:[%s4119_s3 + $0xb4] sm:$0xf] %vm1875_vm8, %v1856_v17  ;;  %v1005_v6 = vsel %vm1004_vm9, %v2451_v41, %v1001_v33  ;;  %v1479_v15 = vsub.f32 1.0, %v1478_v59  ;;  %v2461_v3 = vpop.eup %2460  ;;  %vm1483_vm11 = vweird.f32 %v2457_v49  ;;  %v1488_v14 = vand.u32 2147483648, %v3997_v0 }
 0x1ad   :  { %v1872_v20 = vpack.c.bf16 %v1808_v37, %v1808_v37  ;;  %v1010_v55 = vsel %vm4009_vm3, %v1009_v51, %v1005_v6  ;;  %v1245_v5 = vsel %vm1244_vm10, %v2453_v8, %v1241_v19  ;;  %v1718_v24 = vmul.f32 %v2461_v3, %v4003_v25 }
 0x1ae   :  { %v1761_v10 = vmul.f32 %v1010_v55, %v3908_v31  ;;  %v1250_v56 = vsel %vm4026_vm7, %v1249_v35, %v1245_v5  ;;  %v1480_v22 = vmul.f32 %v2457_v49, %v1479_v15  ;;  %vm1482_vm12 = vweird.f32 %v3997_v0 }
 0x1af   :  { %1937 = vst.msk [vmem:[%s4119_s3 + $0xf4] sm:$0xf] %vm1875_vm8, %v1872_v20  ;;  %v1777_v28 = vmul.f32 %v1250_v56, %v3911_v45  ;;  %vm4056_vm13 = vcmp.eq.f32.partialorder %v1486_v23, 8.507059e+37  ;;  %v1726_v26 = vand.u32 2147483647, %v4003_v25  ;;  %v1719_v1 = vsub.f32 1.0, %v1718_v24  ;;  %vm1484_vm14 = vmor %vm1482_vm12, %vm1483_vm11 }
 0x1b0   :  { %v1825_v7 = vpack.c.bf16 %v1761_v10, %v1761_v10  ;;  %v1481_v36 = vadd.f32 %v2457_v49, %v1480_v22  ;;  %v4061_v31 = vadd.f32 1.0, %v2459_v50  ;;  %v1489_v62 = vor.u32 1.1754944e-38, %v1488_v14 }
 0x1b1   :  { %v2463_v40 = vpop.eup %2462  ;;  %v1841_v9 = vpack.c.bf16 %v1777_v28, %v1777_v28  ;;  %v1728_v45 = vand.u32 2147483648, %v4003_v25  ;;  %2464 = vpow2.f32 %v3986_v42  ;;  %v1720_v41 = vmul.f32 %v2461_v3, %v1719_v1 }
 0x1b2   :  { %1890 = vst.msk [vmem:[%s4119_s3 + $0x38] sm:$0xf] %vm1875_vm8, %v1825_v7  ;;  %v1485_v0 = vsel %vm1484_vm14, %v2457_v49, %v1481_v36  ;;  %vm1723_vm15 = vweird.f32 %v2461_v3  ;;  %v1013_v61 = vmul.f32 %v2463_v40, %v4023_v27  ;;  %vm1722_vm0 = vweird.f32 %v4003_v25 }
 0x1b3   :  { %1906 = vst.msk [vmem:[%s4119_s3 + $0x78] sm:$0xf] %vm1875_vm8, %v1841_v9  ;;  %v1490_v8 = vsel %vm4056_vm13, %v1489_v62, %v1485_v0  ;;  %2466 = vrcp.f32 %v4061_v31  ;;  %v1721_v52 = vadd.f32 %v2461_v3, %v1720_v41  ;;  %vm1727_vm1 = vcmp.eq.f32.partialorder %v1726_v26, 8.507059e+37  ;;  %vm1724_vm2 = vmor %vm1722_vm0, %vm1723_vm15 }
 0x1b4   :  { %v1793_v42 = vmul.f32 %v1490_v8, %v3914_v53  ;;  %v1014_v32 = vsub.f32 1.0, %v1013_v61  ;;  %v1729_v39 = vor.u32 1.1754944e-38, %v1728_v45  ;;  %v1021_v63 = vand.u32 2147483647, %v4023_v27 }
 0x1b5   :  { %v1023_v30 = vand.u32 2147483648, %v4023_v27  ;;  %2468 = vpow2.f32 %v2175_v44  ;;  %v1725_v18 = vsel %vm1724_vm2, %v2461_v3, %v1721_v52  ;;  %vm1018_vm3 = vweird.f32 %v2463_v40 }
 0x1b6   :  { %v1857_v57 = vpack.c.bf16 %v1793_v42, %v1793_v42  ;;  %v1015_v47 = vmul.f32 %v2463_v40, %v1014_v32  ;;  %v1730_v25 = vsel %vm1727_vm1, %v1729_v39, %v1725_v18  ;;  %vm1017_vm4 = vweird.f32 %v4023_v27 }
 0x1b7   :  { %v2465_v2 = vpop.eup %2464  ;;  %v1809_v53 = vmul.f32 %v1730_v25, %v3931_v29  ;;  %vm1019_vm5 = vmor %vm1017_vm4, %vm1018_vm3  ;;  %v1024_v51 = vor.u32 1.1754944e-38, %v1023_v30  ;;  %vm1022_vm6 = vcmp.eq.f32.partialorder %v1021_v63, 8.507059e+37  ;;  %v1261_v27 = vand.u32 2147483647, %v4061_v31 }
 0x1b8   :  { %1922 = vst.msk [vmem:[%s4119_s3 + $0xb8] sm:$0xf] %vm1875_vm8, %v1857_v57  ;;  %v1016_v43 = vadd.f32 %v2463_v40, %v1015_v47  ;;  %v770_v38 = vadd.f32 1.0, %v2465_v2  ;;  %v1263_v37 = vand.u32 2147483648, %v4061_v31  ;;  %vm1257_vm9 = vweird.f32 %v4061_v31 }
 0x1b9   :  { %v2467_v21 = vpop.eup %2466  ;;  %v1873_v12 = vpack.c.bf16 %v1809_v53, %v1809_v53  ;;  %vm1262_vm11 = vcmp.eq.f32.partialorder %v1261_v27, 8.507059e+37 }
 0x1ba   :  { %v1020_v13 = vsel %vm1019_vm5, %v2463_v40, %v1016_v43  ;;  %v1253_v54 = vmul.f32 %v2467_v21, %v4061_v31  ;;  %2470 = vrcp.f32 %v770_v38  ;;  %vm1258_vm7 = vweird.f32 %v2467_v21 }
 0x1bb   :  { %v2469_v49 = vpop.eup %2468  ;;  %v1025_v17 = vsel %vm1022_vm6, %v1024_v51, %v1020_v13  ;;  %1938 = vst.msk [vmem:[%s4119_s3 + $0xf8] sm:$0xf] %vm1875_vm8, %v1873_v12  ;;  %vm1259_vm10 = vmor %vm1257_vm9, %vm1258_vm7  ;;  %v1503_v44 = vand.u32 2147483648, %v770_v38  ;;  %v1501_v14 = vand.u32 2147483647, %v770_v38  ;;  %vm1497_vm13 = vweird.f32 %v770_v38 }
 0x1bc   :  { %v1762_v29 = vmul.f32 %v1025_v17, %v3942_v11  ;;  %v1254_v46 = vsub.f32 1.0, %v1253_v54  ;;  %v786_v48 = vadd.f32 1.0, %v2469_v49  ;;  %v1264_v11 = vor.u32 1.1754944e-38, %v1263_v37 }
 0x1bd   :  { %v1504_v24 = vor.u32 1.1754944e-38, %v1503_v44  ;;  %vm1502_vm0 = vcmp.eq.f32.partialorder %v1501_v14, 8.507059e+37 }
 0x1be   :  { %v1826_v33 = vpack.c.bf16 %v1762_v29, %v1762_v29  ;;  %v1255_v4 = vmul.f32 %v2467_v21, %v1254_v46  ;;  %2472 = vrcp.f32 %v786_v48  ;;  %v1743_v22 = vand.u32 2147483648, %v786_v48 }
 0x1bf   :  { %vm1737_vm1 = vweird.f32 %v786_v48 }
 0x1c0   :  { %1891 = vst.msk [vmem:[%s4119_s3 + $0x3c] sm:$0xf] %vm1875_vm8, %v1826_v33  ;;  %v1256_v59 = vadd.f32 %v2467_v21, %v1255_v4  ;;  %v2471_v19 = vpop.eup %2470  ;;  %v1744_v1 = vor.u32 1.1754944e-38, %v1743_v22 }
 0x1c1   :  { %v1493_v23 = vmul.f32 %v2471_v19, %v770_v38  ;;  %vm1498_vm12 = vweird.f32 %v2471_v19 }
 0x1c2   :  { %v1260_v35 = vsel %vm1259_vm10, %v2467_v21, %v1256_v59  ;;  %vm1499_vm14 = vmor %vm1497_vm13, %vm1498_vm12 }
 0x1c3   :  { %v1265_v50 = vsel %vm1262_vm11, %v1264_v11, %v1260_v35  ;;  %v1494_v15 = vsub.f32 1.0, %v1493_v23 }
 0x1c4   :  { %v2473_v20 = vpop.eup %2472  ;;  %v1778_v6 = vmul.f32 %v1265_v50, %v3952_v60  ;;  %v1741_v60 = vand.u32 2147483647, %v786_v48 }
 0x1c5   :  { %v1733_v3 = vmul.f32 %v2473_v20, %v786_v48  ;;  %v1495_v5 = vmul.f32 %v2471_v19, %v1494_v15  ;;  %vm1738_vm15 = vweird.f32 %v2473_v20 }
 0x1c6   :  { %v1842_v55 = vpack.c.bf16 %v1778_v6, %v1778_v6  ;;  %vm1739_vm2 = vmor %vm1737_vm1, %vm1738_vm15  ;;  %vm1742_vm3 = vcmp.eq.f32.partialorder %v1741_v60, 8.507059e+37 }
 0x1c7   :  { %v1734_v10 = vsub.f32 1.0, %v1733_v3  ;;  %v1496_v56 = vadd.f32 %v2471_v19, %v1495_v5 }
 0x1c8   :  { %1907 = vst.msk [vmem:[%s4119_s3 + $0x7c] sm:$0xf] %vm1875_vm8, %v1842_v55 }
 0x1c9   :  { %v1735_v28 = vmul.f32 %v2473_v20, %v1734_v10  ;;  %v1500_v16 = vsel %vm1499_vm14, %v2471_v19, %v1496_v56 }
 0x1ca   :  { %v1505_v26 = vsel %vm1502_vm0, %v1504_v24, %v1500_v16 }
 0x1cb   :  { %v1736_v7 = vadd.f32 %v2473_v20, %v1735_v28  ;;  %v1794_v36 = vmul.f32 %v1505_v26, %v3955_v34 }
 0x1cd   :  { %v1740_v31 = vsel %vm1739_vm2, %v2473_v20, %v1736_v7  ;;  %v1858_v40 = vpack.c.bf16 %v1794_v36, %v1794_v36 }
 0x1ce   :  { %v1745_v9 = vsel %vm1742_vm3, %v1744_v1, %v1740_v31 }
 0x1cf   :  { %v1810_v62 = vmul.f32 %v1745_v9, %v3994_v58  ;;  %1923 = vst.msk [vmem:[%s4119_s3 + $0xbc] sm:$0xf] %vm1875_vm8, %v1858_v40 }
 0x1d1   :  { %v1874_v45 = vpack.c.bf16 %v1810_v62, %v1810_v62 }
 0x1d3   :  { %1939 = vst.msk [vmem:[%s4119_s3 + $0xfc] sm:$0xf] %vm1875_vm8, %v1874_v45 }

</bundles_post_ra>
